<compile_context>
chip_gen: v7x
topology: tpu7x:2x2x1
jax: 0.10.0
libtpu: 0.0.40
codegen_flags: <defaults>
</compile_context>

<pallas_src>
import functools

import jax
import jax.numpy as jnp
import numpy as np
from jax.experimental import pallas as pl
from jax.experimental.pallas import tpu as pltpu


def _round_up(x, m):
    return ((x + m - 1) // m) * m


def _full_spec(shape):
    """Whole-array block for a grid-less pallas_call."""
    return pl.BlockSpec(shape, lambda: tuple(0 for _ in shape))


# -----------------------------------------------------------------------------
# Pallas kernel 1: conv1 as im2col matmul (+ scale + bias + ReLU), tiled over M.
# -----------------------------------------------------------------------------
def _conv1_matmul_kernel(scale_ref, x_ref, w_ref, b_ref, o_ref):
    acc = jnp.dot(x_ref[...], w_ref[...], preferred_element_type=jnp.float32)
    # scale*(x@w) + b  ==  ((scale*x)@w) + b   (the /255-if-needed factor)
    acc = acc * scale_ref[0] + b_ref[...]
    o_ref[...] = jnp.maximum(acc, 0.0).astype(o_ref.dtype)


def pallas_conv1_matmul(cols, w_mat, bias, scale, *, tm=512):
    """cols:(M,K) @ w:(K,N) * scale + b, ReLU.  Grid over M (parallel)."""
    M, K = cols.shape
    N = w_mat.shape[1]
    Mp = _round_up(M, 8)                       # sublane-aligned row count
    if Mp != M:
        cols = jnp.pad(cols, ((0, Mp - M), (0, 0)))
    tm = min(tm, Mp)
    grid = (pl.cdiv(Mp, tm),)
    out = pl.pallas_call(
        _conv1_matmul_kernel,
        out_shape=jax.ShapeDtypeStruct((Mp, N), jnp.float32),
        grid=grid,
        in_specs=[
            pl.BlockSpec(memory_space=pltpu.MemorySpace.SMEM),   # scale (1,)
            pl.BlockSpec((tm, K), lambda i: (i, 0)),
            pl.BlockSpec((K, N), lambda i: (0, 0)),
            pl.BlockSpec((1, N), lambda i: (0, 0)),
        ],
        out_specs=pl.BlockSpec((tm, N), lambda i: (i, 0)),
        compiler_params=pltpu.CompilerParams(dimension_semantics=("parallel",)),
    )(scale, cols, w_mat, bias.reshape(1, N))
    return out[:M]


# -----------------------------------------------------------------------------
# Pallas kernel 2: fused conv2 + conv3 + feature layer + dueling head.
# -----------------------------------------------------------------------------
def _fused_head_kernel(cols2_ref, w2_ref, b2_ref, w3_ref, b3_ref,
                       wf_ref, bf_ref, wh_ref, bh_ref, wq_ref, bq_ref,
                       o_ref, *, n_pos, bp, c2):
    # conv2: matmul + bias + ReLU on position-major im2col columns.
    h2 = jnp.dot(cols2_ref[...], w2_ref[...], preferred_element_type=jnp.float32)
    h2 = jnp.maximum(h2 + b2_ref[...], 0.0)                       # (n_pos*bp, c2)

    # conv3: its window covers the entire conv2 output (1x1 spatial result),
    # so it is a sum of per-position matmuls -> avoids any in-kernel reshape.
    c3 = w3_ref.shape[1]
    acc = jnp.zeros((bp, c3), jnp.float32)
    for p in range(n_pos):                                        # static unroll
        acc = acc + jnp.dot(h2[p * bp:(p + 1) * bp, :],
                            w3_ref[p * c2:(p + 1) * c2, :],
                            preferred_element_type=jnp.float32)
    y3 = jnp.maximum(acc + b3_ref[...], 0.0)                      # (bp, c3)

    # feature layer
    feat = jnp.maximum(
        jnp.dot(y3, wf_ref[...], preferred_element_type=jnp.float32) + bf_ref[...],
        0.0)
    # merged value|advantage hidden layer
    hid = jnp.maximum(
        jnp.dot(feat, wh_ref[...], preferred_element_type=jnp.float32) + bh_ref[...],
        0.0)
    # final layer; the dueling combine q = v + (a - mean(a)) is folded into wq/bq
    q = jnp.dot(hid, wq_ref[...], preferred_element_type=jnp.float32) + bq_ref[...]
    o_ref[...] = q.astype(o_ref.dtype)


def pallas_fused_head(cols2, w2, b2, w3, b3, wf, bf, wh, bh, wq, bq, *, n_pos, bp):
    c2 = w2.shape[1]
    a_dim = wq.shape[1]
    args = [cols2, w2, b2.reshape(1, -1), w3, b3.reshape(1, -1),
            wf, bf.reshape(1, -1), wh, bh.reshape(1, -1), wq, bq.reshape(1, -1)]
    return pl.pallas_call(
        functools.partial(_fused_head_kernel, n_pos=n_pos, bp=bp, c2=c2),
        out_shape=jax.ShapeDtypeStruct((bp, a_dim), jnp.float32),
        in_specs=[_full_spec(a.shape) for a in args],
        out_specs=_full_spec((bp, a_dim)),
    )(*args)


# -----------------------------------------------------------------------------
# Glue: im2col patch extraction (pure data movement, fused by XLA)
# -----------------------------------------------------------------------------
def im2col(x, k, s):
    """x:(B,H,W,C) -> cols:(B*OH*OW, k*k*C); rows (b,oh,ow)-major, cols (kh,kw,c)."""
    B, H, W, C = x.shape
    OH = (H - k) // s + 1
    OW = (W - k) // s + 1
    patches = []
    for kh in range(k):
        for kw in range(k):
            patches.append(x[:, kh:kh + s * OH:s, kw:kw + s * OW:s, :])  # (B,OH,OW,C)
    cols = jnp.stack(patches, axis=3)                 # (B, OH, OW, k*k, C)
    return cols.reshape(B * OH * OW, k * k * C), (B, OH, OW)


def im2col_position_major(y, k, s, bp):
    """y:(B,H,W,C) -> cols:(OH*OW*bp, k*k*C); row = p*bp + b, with the batch
    zero-padded to bp (a multiple of 8) so the fused kernel slices whole
    sublane tiles per spatial position."""
    B, H, W, C = y.shape
    OH = (H - k) // s + 1
    OW = (W - k) // s + 1
    pats = []
    for oh in range(OH):
        for ow in range(OW):
            pats.append(y[:, oh * s:oh * s + k, ow * s:ow * s + k, :].reshape(B, k * k * C))
    cols = jnp.stack(pats, axis=0)                    # (OH*OW, B, k*k*C)
    if bp > B:
        cols = jnp.pad(cols, ((0, 0), (0, bp - B), (0, 0)))
    return cols.reshape(OH * OW * bp, k * k * C), OH * OW


# -----------------------------------------------------------------------------
# DuelingCNN forward (parameters created deterministically in-script)
# -----------------------------------------------------------------------------
class DuelingCNNPallas:
    def __init__(self, input_shape, output_dim, feature_dim=64,
                 kernel_sizes=(8, 4, 3), strides=(4, 2, 1), channels=(32, 64, 64),
                 key=jax.random.PRNGKey(0)):
        assert len(kernel_sizes) == len(strides) == len(channels) == 3
        self.input_shape = input_shape        # (C, H, W), PyTorch convention
        self.output_dim = output_dim
        self.feature_dim = feature_dim
        self.kernel_sizes = tuple(kernel_sizes)
        self.strides = tuple(strides)
        self.channels = tuple(channels)

        # conv geometry
        H, W = input_shape[1], input_shape[2]
        spatial = []
        for k, s in zip(kernel_sizes, strides):
            H = (H - k) // s + 1
            W = (W - k) // s + 1
            spatial.append((H, W))
        (h2, w2), (h3, w3) = spatial[1], spatial[2]
        # The fused head requires conv3's window to cover the whole conv2 output.
        # TODO(synk): generalize the fused head to conv3 outputs larger than 1x1.
        assert h3 == 1 and w3 == 1 and h2 == kernel_sizes[2] and w2 == kernel_sizes[2], \
            "fused head requires the last conv to reduce the feature map to 1x1"
        self.conv_out_dim = channels[2] * h3 * w3

        keys = jax.random.split(key, 16)
        ki = iter(range(16))
        gain = float(np.sqrt(2.0))
        # TODO(synk): orthogonal init replaced by scaled normal (init-time only;
        #             forward-pass semantics are unaffected).

        # conv weights in HWIO layout, zero biases (matches nn.init.zeros_(bias))
        self.conv_w, self.conv_b = [], []
        cin = input_shape[0]
        for k, s, cout in zip(kernel_sizes, strides, channels):
            fan_in = k * k * cin
            w = gain * jax.random.normal(keys[next(ki)], (k, k, cin, cout),
                                         dtype=jnp.float32) / np.sqrt(fan_in)
            self.conv_w.append(w)
            self.conv_b.append(jnp.zeros((cout,), jnp.float32))
            cin = cout

        def lin(key_, fin, fout):
            w = gain * jax.random.normal(key_, (fin, fout), dtype=jnp.float32) / np.sqrt(fin)
            return w, jnp.zeros((fout,), jnp.float32)

        self.feat_w, self.feat_b = lin(keys[next(ki)], self.conv_out_dim, feature_dim)
        half = feature_dim // 2
        self.val1_w, self.val1_b = lin(keys[next(ki)], feature_dim, half)
        self.val2_w, self.val2_b = lin(keys[next(ki)], half, 1)
        self.adv1_w, self.adv1_b = lin(keys[next(ki)], feature_dim, half)
        self.adv2_w, self.adv2_b = lin(keys[next(ki)], half, output_dim)

        # ---- fused / folded parameters used by the Pallas kernels ----
        # conv weights as (k*k*Cin, Cout) matmul operands (rows ordered (kh,kw,cin))
        self.w1_mat = self.conv_w[0].reshape(-1, channels[0])
        self.w2_mat = self.conv_w[1].reshape(-1, channels[1])
        self.w3_mat = self.conv_w[2].reshape(-1, channels[2])
        # merged value|advantage hidden layer (one matmul for both streams)
        self.wh = jnp.concatenate([self.val1_w, self.adv1_w], axis=1)    # (F, 2*half)
        self.bh = jnp.concatenate([self.val1_b, self.adv1_b], axis=0)    # (2*half,)
        # final layer with the dueling combine folded in (exact linear algebra):
        # q = value*1^T + adv @ (I - J/A)
        A = output_dim
        center = jnp.eye(A, dtype=jnp.float32) - jnp.ones((A, A), jnp.float32) / A
        self.wq = jnp.concatenate([self.val2_w @ jnp.ones((1, A), jnp.float32),
                                   self.adv2_w @ center], axis=0)         # (2*half, A)
        self.bq = self.val2_b[0] + self.adv2_b @ center                   # (A,)

    def __call__(self, x):
        """x: NCHW float tensor (or CHW). Returns q-values (B, output_dim)."""
        if x.ndim == 3:
            x = x[None]
        x = x.astype(jnp.float32)
        # scalar "/255 if max>1" factor, applied inside the conv1 kernel (SMEM)
        scale = jnp.where(jnp.max(x) > 1.0,
                          jnp.float32(1.0 / 255.0), jnp.float32(1.0)).reshape(1)
        xh = jnp.transpose(x, (0, 2, 3, 1))                    # NCHW -> NHWC
        B = xh.shape[0]
        k1, k2, _ = self.kernel_sizes
        s1, s2, _ = self.strides

        # ---- Pallas launch #1: conv1 ----
        cols1, (_, oh1, ow1) = im2col(xh, k1, s1)
        y1 = pallas_conv1_matmul(cols1, self.w1_mat, self.conv_b[0], scale)
        y1 = y1.reshape(B, oh1, ow1, self.channels[0])

        # ---- Pallas launch #2: conv2 + conv3 + feature + dueling head ----
        bp = _round_up(B, 8)
        cols2, n_pos = im2col_position_major(y1, k2, s2, bp)
        q_pad = pallas_fused_head(
            cols2, self.w2_mat, self.conv_b[1], self.w3_mat, self.conv_b[2],
            self.feat_w, self.feat_b, self.wh, self.bh, self.wq, self.bq,
            n_pos=n_pos, bp=bp)
        return q_pad[:B]


# -----------------------------------------------------------------------------
# Pure-JAX reference of the original PyTorch forward (for a numerical self-check)
# -----------------------------------------------------------------------------
def reference_forward(model, x):
    if x.ndim == 3:
        x = x[None]
    xf = x.astype(jnp.float32)
    xf = jnp.where(jnp.max(xf) > 1.0, xf / 255.0, xf)
    h = jnp.transpose(xf, (0, 2, 3, 1))
    hp = jax.lax.Precision.HIGHEST
    for w, b, s in zip(model.conv_w, model.conv_b, model.strides):
        h = jax.lax.conv_general_dilated(h, w, (s, s), "VALID",
                                         dimension_numbers=("NHWC", "HWIO", "NHWC"),
                                         precision=hp)
        h = jnp.maximum(h + b, 0.0)
    B = h.shape[0]
    flat = jnp.transpose(h, (0, 3, 1, 2)).reshape(B, -1)
    relu = lambda t: jnp.maximum(t, 0.0)
    feat = relu(jnp.dot(flat, model.feat_w, precision=hp) + model.feat_b)
    vh = relu(jnp.dot(feat, model.val1_w, precision=hp) + model.val1_b)
    value = jnp.dot(vh, model.val2_w, precision=hp) + model.val2_b
    ah = relu(jnp.dot(feat, model.adv1_w, precision=hp) + model.adv1_b)
    adv = jnp.dot(ah, model.adv2_w, precision=hp) + model.adv2_b
    return value + (adv - adv.mean(axis=1, keepdims=True))


# -----------------------------------------------------------------------------
if __name__ == "__main__":
    # small shapes: batch=2, input image (4, 36, 36) -> conv chain 36->8->3->1
    input_shape = (4, 36, 36)
    output_dim = 6
    batch = 2

    key = jax.random.PRNGKey(0)
    k_x, k_params = jax.random.split(key)
    x = jax.random.uniform(k_x, (batch,) + input_shape, dtype=jnp.float32)

    model = DuelingCNNPallas(input_shape, output_dim, feature_dim=64, key=k_params)
    forward = jax.jit(model.__call__)
    q = jax.block_until_ready(forward(x))

    assert q.shape == (batch, output_dim), q.shape
    assert bool(jnp.all(jnp.isfinite(q)))

    # numerical self-check against the pure-JAX reference of the original module
    q_ref = jax.block_until_ready(reference_forward(model, x))
    assert jnp.allclose(q, q_ref, rtol=1e-2, atol=1e-3), (q, q_ref)

    print("KERNEL_OK")
</pallas_src>

<mosaic_0001>
module attributes {stable_mosaic.version = 11 : i64} {
  func.func @_conv1_matmul_kernel(%arg0: i32, %arg1: memref<1xf32, #tpu.memory_space<smem>>, %arg2: memref<128x256xf32, #tpu.memory_space<vmem>>, %arg3: memref<256x32xf32, #tpu.memory_space<vmem>>, %arg4: memref<1x32xf32, #tpu.memory_space<vmem>>, %arg5: memref<128x32xf32, #tpu.memory_space<vmem>>) attributes {dimension_semantics = [#tpu.dimension_semantics<parallel>], iteration_bounds = array<i64: 1>, scalar_prefetch = 0 : i64, scratch_operands = 0 : i64, tpu.core_type = #tpu.core_type<tc>, window_params = [{transform_indices = @transform_0, window_bounds = array<i64: 1>}, {transform_indices = @transform_1, window_bounds = array<i64: 128, 256>}, {pipeline_mode = #tpu.pipeline_mode<synchronous>, transform_indices = @transform_2, window_bounds = array<i64: 256, 32>}, {pipeline_mode = #tpu.pipeline_mode<synchronous>, transform_indices = @transform_3, window_bounds = array<i64: 1, 32>}, {transform_indices = @transform_4, window_bounds = array<i64: 128, 32>}]} {
    %c0 = arith.constant 0 : index
    %c0_0 = arith.constant 0 : index
    %0 = vector.load %arg2[%c0, %c0_0] : memref<128x256xf32, #tpu.memory_space<vmem>>, vector<128x256xf32>
    %c0_1 = arith.constant 0 : index
    %c0_2 = arith.constant 0 : index
    %1 = vector.load %arg3[%c0_1, %c0_2] : memref<256x32xf32, #tpu.memory_space<vmem>>, vector<256x32xf32>
    %cst = arith.constant dense<0.000000e+00> : vector<128x32xf32>
    %2 = tpu.matmul %0, %1, %cst {dimension_numbers = #tpu.dot_dimension_numbers<[1], [0], [0], [1], [0, 0, 1, 1], [], []>} : vector<128x256xf32>, vector<256x32xf32>, vector<128x32xf32> -> vector<128x32xf32>
    %c0_3 = arith.constant 0 : index
    %3 = memref.load %arg1[%c0_3] : memref<1xf32, #tpu.memory_space<smem>>
    %4 = vector.broadcast %3 : f32 to vector<128x32xf32>
    %5 = arith.mulf %2, %4 : vector<128x32xf32>
    %c0_4 = arith.constant 0 : index
    %c0_5 = arith.constant 0 : index
    %6 = vector.load %arg4[%c0_4, %c0_5] : memref<1x32xf32, #tpu.memory_space<vmem>>, vector<1x32xf32>
    %7 = vector.broadcast %6 : vector<1x32xf32> to vector<128x32xf32>
    %8 = arith.addf %5, %7 : vector<128x32xf32>
    %cst_6 = arith.constant 0.000000e+00 : f32
    %9 = vector.broadcast %cst_6 : f32 to vector<128x32xf32>
    %10 = arith.maximumf %8, %9 : vector<128x32xf32>
    %c0_7 = arith.constant 0 : index
    %c0_8 = arith.constant 0 : index
    %11 = vector.load %arg5[%c0_7, %c0_8] : memref<128x32xf32, #tpu.memory_space<vmem>>, vector<128x32xf32>
    tpu.vector_store %arg5[%c0_7, %c0_8], %10 {strides = array<i32>} : memref<128x32xf32, #tpu.memory_space<vmem>>, vector<128x32xf32>,
    return
  }
  func.func @transform_0(%arg0: i32) -> i32 {
    %c0_i32 = arith.constant 0 : i32
    %c0_i32_0 = arith.constant 0 : i32
    return %c0_i32 : i32
  }
  func.func @transform_1(%arg0: i32) -> (i32, i32) {
    %c0_i32 = arith.constant 0 : i32
    %c0_i32_0 = arith.constant 0 : i32
    return %arg0, %c0_i32 : i32, i32
  }
  func.func @transform_2(%arg0: i32) -> (i32, i32) {
    %c0_i32 = arith.constant 0 : i32
    %c0_i32_0 = arith.constant 0 : i32
    %c0_i32_1 = arith.constant 0 : i32
    return %c0_i32, %c0_i32_0 : i32, i32
  }
  func.func @transform_3(%arg0: i32) -> (i32, i32) {
    %c0_i32 = arith.constant 0 : i32
    %c0_i32_0 = arith.constant 0 : i32
    %c0_i32_1 = arith.constant 0 : i32
    return %c0_i32, %c0_i32_0 : i32, i32
  }
  func.func @transform_4(%arg0: i32) -> (i32, i32) {
    %c0_i32 = arith.constant 0 : i32
    %c0_i32_0 = arith.constant 0 : i32
    return %arg0, %c0_i32 : i32, i32
  }
}

module attributes {stable_mosaic.version = 11 : i64} {
  func.func @_fused_head_kernel(%arg0: memref<72x512xf32, #tpu.memory_space<vmem>>, %arg1: memref<512x64xf32, #tpu.memory_space<vmem>>, %arg2: memref<1x64xf32, #tpu.memory_space<vmem>>, %arg3: memref<576x64xf32, #tpu.memory_space<vmem>>, %arg4: memref<1x64xf32, #tpu.memory_space<vmem>>, %arg5: memref<64x64xf32, #tpu.memory_space<vmem>>, %arg6: memref<1x64xf32, #tpu.memory_space<vmem>>, %arg7: memref<64x64xf32, #tpu.memory_space<vmem>>, %arg8: memref<1x64xf32, #tpu.memory_space<vmem>>, %arg9: memref<64x6xf32, #tpu.memory_space<vmem>>, %arg10: memref<1x6xf32, #tpu.memory_space<vmem>>, %arg11: memref<8x6xf32, #tpu.memory_space<vmem>>) attributes {dimension_semantics = [], scalar_prefetch = 0 : i64, scratch_operands = 0 : i64, tpu.core_type = #tpu.core_type<tc>} {
    %c0 = arith.constant 0 : index
    %c0_0 = arith.constant 0 : index
    %0 = vector.load %arg0[%c0, %c0_0] : memref<72x512xf32, #tpu.memory_space<vmem>>, vector<72x512xf32>
    %c0_1 = arith.constant 0 : index
    %c0_2 = arith.constant 0 : index
    %1 = vector.load %arg1[%c0_1, %c0_2] : memref<512x64xf32, #tpu.memory_space<vmem>>, vector<512x64xf32>
    %cst = arith.constant dense<0.000000e+00> : vector<72x64xf32>
    %2 = tpu.matmul %0, %1, %cst {dimension_numbers = #tpu.dot_dimension_numbers<[1], [0], [0], [1], [0, 0, 1, 1], [], []>} : vector<72x512xf32>, vector<512x64xf32>, vector<72x64xf32> -> vector<72x64xf32>
    %c0_3 = arith.constant 0 : index
    %c0_4 = arith.constant 0 : index
    %3 = vector.load %arg2[%c0_3, %c0_4] : memref<1x64xf32, #tpu.memory_space<vmem>>, vector<1x64xf32>
    %4 = vector.broadcast %3 : vector<1x64xf32> to vector<72x64xf32>
    %5 = arith.addf %2, %4 : vector<72x64xf32>
    %cst_5 = arith.constant 0.000000e+00 : f32
    %6 = vector.broadcast %cst_5 : f32 to vector<72x64xf32>
    %7 = arith.maximumf %5, %6 : vector<72x64xf32>
    %cst_6 = arith.constant 0.000000e+00 : f32
    %8 = vector.broadcast %cst_6 : f32 to vector<8x64xf32>
    %9 = vector.extract_strided_slice %7 {offsets = [0, 0], sizes = [8, 64], strides = [1, 1]} : vector<72x64xf32> to vector<8x64xf32>
    %c0_7 = arith.constant 0 : index
    %c0_8 = arith.constant 0 : index
    %10 = vector.load %arg3[%c0_7, %c0_8] : memref<576x64xf32, #tpu.memory_space<vmem>>, vector<64x64xf32>
    %cst_9 = arith.constant dense<0.000000e+00> : vector<8x64xf32>
    %11 = tpu.matmul %9, %10, %cst_9 {dimension_numbers = #tpu.dot_dimension_numbers<[1], [0], [0], [1], [0, 0, 1, 1], [], []>} : vector<8x64xf32>, vector<64x64xf32>, vector<8x64xf32> -> vector<8x64xf32>
    %12 = arith.addf %8, %11 : vector<8x64xf32>
    %13 = vector.extract_strided_slice %7 {offsets = [8, 0], sizes = [8, 64], strides = [1, 1]} : vector<72x64xf32> to vector<8x64xf32>
    %c64 = arith.constant 64 : index
    %c0_10 = arith.constant 0 : index
    %14 = vector.load %arg3[%c64, %c0_10] : memref<576x64xf32, #tpu.memory_space<vmem>>, vector<64x64xf32>
    %cst_11 = arith.constant dense<0.000000e+00> : vector<8x64xf32>
    %15 = tpu.matmul %13, %14, %cst_11 {dimension_numbers = #tpu.dot_dimension_numbers<[1], [0], [0], [1], [0, 0, 1, 1], [], []>} : vector<8x64xf32>, vector<64x64xf32>, vector<8x64xf32> -> vector<8x64xf32>
    %16 = arith.addf %12, %15 : vector<8x64xf32>
    %17 = vector.extract_strided_slice %7 {offsets = [16, 0], sizes = [8, 64], strides = [1, 1]} : vector<72x64xf32> to vector<8x64xf32>
    %c128 = arith.constant 128 : index
    %c0_12 = arith.constant 0 : index
    %18 = vector.load %arg3[%c128, %c0_12] : memref<576x64xf32, #tpu.memory_space<vmem>>, vector<64x64xf32>
    %cst_13 = arith.constant dense<0.000000e+00> : vector<8x64xf32>
    %19 = tpu.matmul %17, %18, %cst_13 {dimension_numbers = #tpu.dot_dimension_numbers<[1], [0], [0], [1], [0, 0, 1, 1], [], []>} : vector<8x64xf32>, vector<64x64xf32>, vector<8x64xf32> -> vector<8x64xf32>
    %20 = arith.addf %16, %19 : vector<8x64xf32>
    %21 = vector.extract_strided_slice %7 {offsets = [24, 0], sizes = [8, 64], strides = [1, 1]} : vector<72x64xf32> to vector<8x64xf32>
    %c192 = arith.constant 192 : index
    %c0_14 = arith.constant 0 : index
    %22 = vector.load %arg3[%c192, %c0_14] : memref<576x64xf32, #tpu.memory_space<vmem>>, vector<64x64xf32>
    %cst_15 = arith.constant dense<0.000000e+00> : vector<8x64xf32>
    %23 = tpu.matmul %21, %22, %cst_15 {dimension_numbers = #tpu.dot_dimension_numbers<[1], [0], [0], [1], [0, 0, 1, 1], [], []>} : vector<8x64xf32>, vector<64x64xf32>, vector<8x64xf32> -> vector<8x64xf32>
    %24 = arith.addf %20, %23 : vector<8x64xf32>
    %25 = vector.extract_strided_slice %7 {offsets = [32, 0], sizes = [8, 64], strides = [1, 1]} : vector<72x64xf32> to vector<8x64xf32>
    %c256 = arith.constant 256 : index
    %c0_16 = arith.constant 0 : index
    %26 = vector.load %arg3[%c256, %c0_16] : memref<576x64xf32, #tpu.memory_space<vmem>>, vector<64x64xf32>
    %cst_17 = arith.constant dense<0.000000e+00> : vector<8x64xf32>
    %27 = tpu.matmul %25, %26, %cst_17 {dimension_numbers = #tpu.dot_dimension_numbers<[1], [0], [0], [1], [0, 0, 1, 1], [], []>} : vector<8x64xf32>, vector<64x64xf32>, vector<8x64xf32> -> vector<8x64xf32>
    %28 = arith.addf %24, %27 : vector<8x64xf32>
    %29 = vector.extract_strided_slice %7 {offsets = [40, 0], sizes = [8, 64], strides = [1, 1]} : vector<72x64xf32> to vector<8x64xf32>
    %c320 = arith.constant 320 : index
    %c0_18 = arith.constant 0 : index
    %30 = vector.load %arg3[%c320, %c0_18] : memref<576x64xf32, #tpu.memory_space<vmem>>, vector<64x64xf32>
    %cst_19 = arith.constant dense<0.000000e+00> : vector<8x64xf32>
    %31 = tpu.matmul %29, %30, %cst_19 {dimension_numbers = #tpu.dot_dimension_numbers<[1], [0], [0], [1], [0, 0, 1, 1], [], []>} : vector<8x64xf32>, vector<64x64xf32>, vector<8x64xf32> -> vector<8x64xf32>
    %32 = arith.addf %28, %31 : vector<8x64xf32>
    %33 = vector.extract_strided_slice %7 {offsets = [48, 0], sizes = [8, 64], strides = [1, 1]} : vector<72x64xf32> to vector<8x64xf32>
    %c384 = arith.constant 384 : index
    %c0_20 = arith.constant 0 : index
    %34 = vector.load %arg3[%c384, %c0_20] : memref<576x64xf32, #tpu.memory_space<vmem>>, vector<64x64xf32>
    %cst_21 = arith.constant dense<0.000000e+00> : vector<8x64xf32>
    %35 = tpu.matmul %33, %34, %cst_21 {dimension_numbers = #tpu.dot_dimension_numbers<[1], [0], [0], [1], [0, 0, 1, 1], [], []>} : vector<8x64xf32>, vector<64x64xf32>, vector<8x64xf32> -> vector<8x64xf32>
    %36 = arith.addf %32, %35 : vector<8x64xf32>
    %37 = vector.extract_strided_slice %7 {offsets = [56, 0], sizes = [8, 64], strides = [1, 1]} : vector<72x64xf32> to vector<8x64xf32>
    %c448 = arith.constant 448 : index
    %c0_22 = arith.constant 0 : index
    %38 = vector.load %arg3[%c448, %c0_22] : memref<576x64xf32, #tpu.memory_space<vmem>>, vector<64x64xf32>
    %cst_23 = arith.constant dense<0.000000e+00> : vector<8x64xf32>
    %39 = tpu.matmul %37, %38, %cst_23 {dimension_numbers = #tpu.dot_dimension_numbers<[1], [0], [0], [1], [0, 0, 1, 1], [], []>} : vector<8x64xf32>, vector<64x64xf32>, vector<8x64xf32> -> vector<8x64xf32>
    %40 = arith.addf %36, %39 : vector<8x64xf32>
    %41 = vector.extract_strided_slice %7 {offsets = [64, 0], sizes = [8, 64], strides = [1, 1]} : vector<72x64xf32> to vector<8x64xf32>
    %c512 = arith.constant 512 : index
    %c0_24 = arith.constant 0 : index
    %42 = vector.load %arg3[%c512, %c0_24] : memref<576x64xf32, #tpu.memory_space<vmem>>, vector<64x64xf32>
    %cst_25 = arith.constant dense<0.000000e+00> : vector<8x64xf32>
    %43 = tpu.matmul %41, %42, %cst_25 {dimension_numbers = #tpu.dot_dimension_numbers<[1], [0], [0], [1], [0, 0, 1, 1], [], []>} : vector<8x64xf32>, vector<64x64xf32>, vector<8x64xf32> -> vector<8x64xf32>
    %44 = arith.addf %40, %43 : vector<8x64xf32>
    %c0_26 = arith.constant 0 : index
    %c0_27 = arith.constant 0 : index
    %45 = vector.load %arg4[%c0_26, %c0_27] : memref<1x64xf32, #tpu.memory_space<vmem>>, vector<1x64xf32>
    %46 = vector.broadcast %45 : vector<1x64xf32> to vector<8x64xf32>
    %47 = arith.addf %44, %46 : vector<8x64xf32>
    %cst_28 = arith.constant 0.000000e+00 : f32
    %48 = vector.broadcast %cst_28 : f32 to vector<8x64xf32>
    %49 = arith.maximumf %47, %48 : vector<8x64xf32>
    %c0_29 = arith.constant 0 : index
    %c0_30 = arith.constant 0 : index
    %50 = vector.load %arg5[%c0_29, %c0_30] : memref<64x64xf32, #tpu.memory_space<vmem>>, vector<64x64xf32>
    %cst_31 = arith.constant dense<0.000000e+00> : vector<8x64xf32>
    %51 = tpu.matmul %49, %50, %cst_31 {dimension_numbers = #tpu.dot_dimension_numbers<[1], [0], [0], [1], [0, 0, 1, 1], [], []>} : vector<8x64xf32>, vector<64x64xf32>, vector<8x64xf32> -> vector<8x64xf32>
    %c0_32 = arith.constant 0 : index
    %c0_33 = arith.constant 0 : index
    %52 = vector.load %arg6[%c0_32, %c0_33] : memref<1x64xf32, #tpu.memory_space<vmem>>, vector<1x64xf32>
    %53 = vector.broadcast %52 : vector<1x64xf32> to vector<8x64xf32>
    %54 = arith.addf %51, %53 : vector<8x64xf32>
    %cst_34 = arith.constant 0.000000e+00 : f32
    %55 = vector.broadcast %cst_34 : f32 to vector<8x64xf32>
    %56 = arith.maximumf %54, %55 : vector<8x64xf32>
    %c0_35 = arith.constant 0 : index
    %c0_36 = arith.constant 0 : index
    %57 = vector.load %arg7[%c0_35, %c0_36] : memref<64x64xf32, #tpu.memory_space<vmem>>, vector<64x64xf32>
    %cst_37 = arith.constant dense<0.000000e+00> : vector<8x64xf32>
    %58 = tpu.matmul %56, %57, %cst_37 {dimension_numbers = #tpu.dot_dimension_numbers<[1], [0], [0], [1], [0, 0, 1, 1], [], []>} : vector<8x64xf32>, vector<64x64xf32>, vector<8x64xf32> -> vector<8x64xf32>
    %c0_38 = arith.constant 0 : index
    %c0_39 = arith.constant 0 : index
    %59 = vector.load %arg8[%c0_38, %c0_39] : memref<1x64xf32, #tpu.memory_space<vmem>>, vector<1x64xf32>
    %60 = vector.broadcast %59 : vector<1x64xf32> to vector<8x64xf32>
    %61 = arith.addf %58, %60 : vector<8x64xf32>
    %cst_40 = arith.constant 0.000000e+00 : f32
    %62 = vector.broadcast %cst_40 : f32 to vector<8x64xf32>
    %63 = arith.maximumf %61, %62 : vector<8x64xf32>
    %c0_41 = arith.constant 0 : index
    %c0_42 = arith.constant 0 : index
    %64 = vector.load %arg9[%c0_41, %c0_42] : memref<64x6xf32, #tpu.memory_space<vmem>>, vector<64x6xf32>
    %cst_43 = arith.constant dense<0.000000e+00> : vector<8x6xf32>
    %65 = tpu.matmul %63, %64, %cst_43 {dimension_numbers = #tpu.dot_dimension_numbers<[1], [0], [0], [1], [0, 0, 1, 1], [], []>} : vector<8x64xf32>, vector<64x6xf32>, vector<8x6xf32> -> vector<8x6xf32>
    %c0_44 = arith.constant 0 : index
    %c0_45 = arith.constant 0 : index
    %66 = vector.load %arg10[%c0_44, %c0_45] : memref<1x6xf32, #tpu.memory_space<vmem>>, vector<1x6xf32>
    %67 = vector.broadcast %66 : vector<1x6xf32> to vector<8x6xf32>
    %68 = arith.addf %65, %67 : vector<8x6xf32>
    %c0_46 = arith.constant 0 : index
    %c0_47 = arith.constant 0 : index
    %69 = vector.load %arg11[%c0_46, %c0_47] : memref<8x6xf32, #tpu.memory_space<vmem>>, vector<8x6xf32>
    tpu.vector_store %arg11[%c0_46, %c0_47], %68 {strides = array<i32>} : memref<8x6xf32, #tpu.memory_space<vmem>>, vector<8x6xf32>,
    return
  }
}

</mosaic_0001>

<bundles_post_ra>
// kernel: a_call__.2
= control target key start
LH: loop header
LB: loop body
LE: loop exit
PB: predicated region body
PF: predicated region fallthrough
CT: control target
= control target key end

     0   :  { %vm284_vm0 = vcmask 261120   ;;  %s757_s2 = inlined_call_operand.vmem [shape: f32[256,32], index: 2, kind: input, shape index: {}]   ;;  %s758_s1 = inlined_call_operand.vmem [shape: f32[128,256], index: 1, kind: input, shape index: {}]   ;;  %s759_s0 = inlined_call_operand.<no memory space> [shape: f32[1], index: 0, kind: input, shape index: {}]   ;;  %s760_s3 = inlined_call_operand.vmem [shape: f32[1,32], index: 3, kind: input, shape index: {}]   ;;  %s761_s4 = inlined_call_operand.vmem [shape: f32[128,32], index: 4, kind: output, shape index: {}]  }
   0x1   :  { %v66_v0 = vld [vmem:[%s757_s2 + $0x80] sm:$0xff]  ;;  %v67_v1 = vld [vmem:[%s757_s2 + $0x88] sm:$0xff]  ;;  %v68_v5 = vld [vmem:[%s757_s2 + $0x90] sm:$0xff] }
   0x2   :  { %v50_v2 = vld [vmem:[%s757_s2] sm:$0xff]  ;;  %v386_v3 = vpack.c.bf16 %v67_v1, %v66_v0  ;;  %v51_v4 = vld [vmem:[%s757_s2 + $0x8] sm:$0xff]  ;;  %v69_v6 = vld [vmem:[%s757_s2 + $0x98] sm:$0xff] }
   0x3   :  { %v388_v7 = vpack.c.bf16 %v51_v4, %v50_v2  ;;  %v390_v8 = vpack.c.bf16 %v69_v6, %v68_v5  ;;  %v52_v9 = vld [vmem:[%s757_s2 + $0x10] sm:$0xff]  ;;  %v53_v10 = vld [vmem:[%s757_s2 + $0x18] sm:$0xff]  ;;  %v70_v11 = vld [vmem:[%s757_s2 + $0xa0] sm:$0xff] }
   0x4   :  { %387 = vmatprep.subr.bf16.mxu0 %v386_v3  ;;  %418 = vmatprep.subr.bf16.mxu1 %v386_v3  ;;  %v71_v12 = vld [vmem:[%s757_s2 + $0xa8] sm:$0xff]  ;;  %v392_v13 = vpack.c.bf16 %v53_v10, %v52_v9  ;;  %v54_v15 = vld [vmem:[%s757_s2 + $0x20] sm:$0xff]  ;;  %v72_v17 = vld [vmem:[%s757_s2 + $0xb0] sm:$0xff] }
   0x5   :  { %389 = vmatpush3.bf16.msra.mxu0 %v388_v7  ;;  %426 = vmatpush3.bf16.msra.mxu1 %v388_v7  ;;  %v394_v14 = vpack.c.bf16 %v71_v12, %v70_v11  ;;  %v55_v16 = vld [vmem:[%s757_s2 + $0x28] sm:$0xff]  ;;  %v73_v18 = vld [vmem:[%s757_s2 + $0xb8] sm:$0xff]  ;;  %v56_v21 = vld [vmem:[%s757_s2 + $0x30] sm:$0xff] }
   0x6   :  { %391 = vmatprep.subr.bf16.mxu0 %v390_v8  ;;  %419 = vmatprep.subr.bf16.mxu1 %v390_v8  ;;  %v396_v19 = vpack.c.bf16 %v55_v16, %v54_v15  ;;  %v398_v20 = vpack.c.bf16 %v73_v18, %v72_v17  ;;  %v57_v22 = vld [vmem:[%s757_s2 + $0x38] sm:$0xff]  ;;  %v74_v23 = vld [vmem:[%s757_s2 + $0xc0] sm:$0xff]  ;;  %v75_v24 = vld [vmem:[%s757_s2 + $0xc8] sm:$0xff] }
   0x7   :  { %v19_v25 = vld [vmem:[%s758_s1 + $0x8] sm:$0xff]  ;;  %v400_v27 = vpack.c.bf16 %v57_v22, %v56_v21  ;;  %v402_v28 = vpack.c.bf16 %v75_v24, %v74_v23  ;;  %v58_v29 = vld [vmem:[%s757_s2 + $0x40] sm:$0xff]  ;;  %v76_v31 = vld [vmem:[%s757_s2 + $0xd0] sm:$0xff] }
   0x8   :  { %146 = vmatprep.mubr.f32.mxu0 %v19_v25  ;;  %v35_v26 = vld [vmem:[%s758_s1 + $0x88] sm:$0xff]  ;;  %v77_v32 = vld [vmem:[%s757_s2 + $0xd8] sm:$0xff]  ;;  %v60_v35 = vld [vmem:[%s757_s2 + $0x50] sm:$0xff] }
   0x9   :  { %393 = vmatpush3.bf16.msra.mxu0 %v392_v13  ;;  %427 = vmatpush3.bf16.msra.mxu1 %v392_v13  ;;  %v59_v30 = vld [vmem:[%s757_s2 + $0x48] sm:$0xff]  ;;  %v406_v34 = vpack.c.bf16 %v77_v32, %v76_v31  ;;  %v61_v36 = vld [vmem:[%s757_s2 + $0x58] sm:$0xff]  ;;  %v78_v37 = vld [vmem:[%s757_s2 + $0xe0] sm:$0xff] }
   0xa   :  { %395 = vmatprep.subr.bf16.mxu0 %v394_v14  ;;  %420 = vmatprep.subr.bf16.mxu1 %v394_v14  ;;  %v404_v33 = vpack.c.bf16 %v59_v30, %v58_v29  ;;  %v79_v38 = vld [vmem:[%s757_s2 + $0xe8] sm:$0xff]  ;;  %v408_v39 = vpack.c.bf16 %v61_v36, %v60_v35  ;;  %v62_v41 = vld [vmem:[%s757_s2 + $0x60] sm:$0xff]  ;;  %v80_v43 = vld [vmem:[%s757_s2 + $0xf0] sm:$0xff] }
   0xb   :  { %186 = vmatprep.mubr.f32.mxu1 %v35_v26  ;;  %v410_v40 = vpack.c.bf16 %v79_v38, %v78_v37  ;;  %v63_v42 = vld [vmem:[%s757_s2 + $0x68] sm:$0xff]  ;;  %v81_v44 = vld [vmem:[%s757_s2 + $0xf8] sm:$0xff]  ;;  %v64_v47 = vld [vmem:[%s757_s2 + $0x70] sm:$0xff] }
   0xc   :  { %v412_v45 = vpack.c.bf16 %v63_v42, %v62_v41  ;;  %v414_v46 = vpack.c.bf16 %v81_v44, %v80_v43  ;;  %v65_v48 = vld [vmem:[%s757_s2 + $0x78] sm:$0xff]  ;;  %v18_v50 = vld [vmem:[%s758_s1] sm:$0xff]  ;;  %v20_v54 = vld [vmem:[%s758_s1 + $0x10] sm:$0xff] }
   0xd   :  { %397 = vmatpush3.bf16.msra.mxu0 %v396_v19  ;;  %428 = vmatpush3.bf16.msra.mxu1 %v396_v19  ;;  %v416_v49 = vpack.c.bf16 %v65_v48, %v64_v47  ;;  %v34_v51 = vld [vmem:[%s758_s1 + $0x80] sm:$0xff]  ;;  %v21_v52 = vld [vmem:[%s758_s1 + $0x18] sm:$0xff]  ;;  %v36_v55 = vld [vmem:[%s758_s1 + $0x90] sm:$0xff]  ;;  %v654_v19 = vstv %s759_s0 }
   0xe   :  { %399 = vmatprep.subr.bf16.mxu0 %v398_v20  ;;  %421 = vmatprep.subr.bf16.mxu1 %v398_v20  ;;  %v37_v53 = vld [vmem:[%s758_s1 + $0x98] sm:$0xff]  ;;  %v23_v56 = vld [vmem:[%s758_s1 + $0x28] sm:$0xff]  ;;  %v22_v58 = vld [vmem:[%s758_s1 + $0x20] sm:$0xff] }
   0xf   :  { %v39_v57 = vld [vmem:[%s758_s1 + $0xa8] sm:$0xff]  ;;  %v38_v59 = vld [vmem:[%s758_s1 + $0xa0] sm:$0xff]  ;;  %v25_v60 = vld [vmem:[%s758_s1 + $0x38] sm:$0xff] }
  0x10   :  { %v41_v61 = vld [vmem:[%s758_s1 + $0xb8] sm:$0xff]  ;;  %v24_v62 = vld [vmem:[%s758_s1 + $0x30] sm:$0xff]  ;;  %v27_v0 = vld [vmem:[%s758_s1 + $0x48] sm:$0xff] }
  0x11   :  { %401 = vmatpush3.bf16.msra.mxu0 %v400_v27  ;;  %429 = vmatpush3.bf16.msra.mxu1 %v400_v27  ;;  %v40_v63 = vld [vmem:[%s758_s1 + $0xb0] sm:$0xff]  ;;  %v43_v1 = vld [vmem:[%s758_s1 + $0xc8] sm:$0xff]  ;;  %v26_v2 = vld [vmem:[%s758_s1 + $0x40] sm:$0xff] }
  0x12   :  { %403 = vmatprep.subr.bf16.mxu0 %v402_v28  ;;  %422 = vmatprep.subr.bf16.mxu1 %v402_v28  ;;  %v42_v3 = vld [vmem:[%s758_s1 + $0xc0] sm:$0xff]  ;;  %v29_v4 = vld [vmem:[%s758_s1 + $0x58] sm:$0xff]  ;;  %v28_v6 = vld [vmem:[%s758_s1 + $0x50] sm:$0xff] }
  0x13   :  { %v45_v5 = vld [vmem:[%s758_s1 + $0xd8] sm:$0xff]  ;;  %v44_v7 = vld [vmem:[%s758_s1 + $0xd0] sm:$0xff]  ;;  %v31_v8 = vld [vmem:[%s758_s1 + $0x68] sm:$0xff] }
  0x14   :  { %v47_v9 = vld [vmem:[%s758_s1 + $0xe8] sm:$0xff]  ;;  %v30_v10 = vld [vmem:[%s758_s1 + $0x60] sm:$0xff]  ;;  %v33_v12 = vld [vmem:[%s758_s1 + $0x78] sm:$0xff] }
  0x15   :  { %405 = vmatpush3.bf16.msra.mxu0 %v404_v33  ;;  %430 = vmatpush3.bf16.msra.mxu1 %v404_v33  ;;  %v46_v11 = vld [vmem:[%s758_s1 + $0xe0] sm:$0xff]  ;;  %v49_v13 = vld [vmem:[%s758_s1 + $0xf8] sm:$0xff]  ;;  %v32_v14 = vld [vmem:[%s758_s1 + $0x70] sm:$0xff] }
  0x16   :  { %407 = vmatprep.subr.bf16.mxu0 %v406_v34  ;;  %423 = vmatprep.subr.bf16.mxu1 %v406_v34  ;;  %v48_v15 = vld [vmem:[%s758_s1 + $0xf0] sm:$0xff]  ;;  %v659_v23 = vld [vmem:[%s760_s3] ss:$0 sm:$0xff] }
  0x19   :  { %409 = vmatpush3.bf16.msra.mxu0 %v408_v39  ;;  %431 = vmatpush3.bf16.msra.mxu1 %v408_v39 }
  0x1a   :  { %411 = vmatprep.subr.bf16.mxu0 %v410_v40  ;;  %424 = vmatprep.subr.bf16.mxu1 %v410_v40 }
  0x1d   :  { %413 = vmatpush3.bf16.msra.mxu0 %v412_v45  ;;  %432 = vmatpush3.bf16.msra.mxu1 %v412_v45 }
  0x1e   :  { %415 = vmatprep.subr.bf16.mxu0 %v414_v46  ;;  %425 = vmatprep.subr.bf16.mxu1 %v414_v46 }
  0x21   :  { %417 = vmatpush3.bf16.msra.mxu0 %v416_v49  ;;  %433 = vmatpush3.bf16.msra.mxu1 %v416_v49 }
  0x24   :  { %147 = vmatmul.mubr.f32.vlgmr.msra.gmra.mrb[0].mxu0 %v18_v50  ;;  %187 = vmatmul.mubr.f32.vlgmr.msra.gmra.mrb[0].mxu1 %v34_v51 }
  0x25   :  { %151 = vmatprep.mubr.f32.mxu0 %v21_v52  ;;  %191 = vmatprep.mubr.f32.mxu1 %v37_v53 }
  0x28   :  { %152 = vmatmul.mubr.f32.gmra.mrb[2].mxu0 %v20_v54  ;;  %192 = vmatmul.mubr.f32.gmra.mrb[2].mxu1 %v36_v55 }
  0x29   :  { %156 = vmatprep.mubr.f32.mxu0 %v23_v56  ;;  %196 = vmatprep.mubr.f32.mxu1 %v39_v57 }
  0x2c   :  { %157 = vmatmul.mubr.f32.gmra.mrb[4].mxu0 %v22_v58  ;;  %197 = vmatmul.mubr.f32.gmra.mrb[4].mxu1 %v38_v59 }
  0x2d   :  { %161 = vmatprep.mubr.f32.mxu0 %v25_v60  ;;  %201 = vmatprep.mubr.f32.mxu1 %v41_v61 }
  0x30   :  { %162 = vmatmul.mubr.f32.gmra.mrb[6].mxu0 %v24_v62  ;;  %202 = vmatmul.mubr.f32.gmra.mrb[6].mxu1 %v40_v63 }
  0x31   :  { %166 = vmatprep.mubr.f32.mxu0 %v27_v0  ;;  %206 = vmatprep.mubr.f32.mxu1 %v43_v1 }
  0x34   :  { %167 = vmatmul.mubr.f32.gmra.mrb[8].mxu0 %v26_v2  ;;  %207 = vmatmul.mubr.f32.gmra.mrb[8].mxu1 %v42_v3 }
  0x35   :  { %171 = vmatprep.mubr.f32.mxu0 %v29_v4  ;;  %211 = vmatprep.mubr.f32.mxu1 %v45_v5 }
  0x38   :  { %172 = vmatmul.mubr.f32.gmra.mrb[10].mxu0 %v28_v6  ;;  %212 = vmatmul.mubr.f32.gmra.mrb[10].mxu1 %v44_v7 }
  0x39   :  { %176 = vmatprep.mubr.f32.mxu0 %v31_v8  ;;  %216 = vmatprep.mubr.f32.mxu1 %v47_v9 }
  0x3c   :  { %177 = vmatmul.mubr.f32.gmra.mrb[12].mxu0 %v30_v10  ;;  %217 = vmatmul.mubr.f32.gmra.mrb[12].mxu1 %v46_v11 }
  0x3d   :  { %181 = vmatprep.mubr.f32.mxu0 %v33_v12  ;;  %221 = vmatprep.mubr.f32.mxu1 %v49_v13 }
  0x40   :  { %182 = vmatmul.mubr.f32.gmra.mrb[14].mxu0 %v32_v14  ;;  %222 = vmatmul.mubr.f32.gmra.mrb[14].mxu1 %v48_v15 }
  0xf7   :  { %v338_v16 = vpop.f32.mrb[0].mxu0  ;;  %v362_v17 = vpop.f32.mrb[0].mxu1 }
  0xf8   :  { %v339_v18 = vpop.f32.mrb[1].mxu0  ;;  %v363_v20 = vpop.f32.mrb[1].mxu1 }
  0xf9   :  { %v340_v21 = vadd.f32 %v339_v18, %v338_v16  ;;  %v364_v22 = vadd.f32 %v363_v20, %v362_v17 }
  0xfb   :  { %v229_v24 = vmul.f32 %v340_v21, %v654_v19  ;;  %v237_v25 = vmul.f32 %v364_v22, %v654_v19  ;;  %v341_v26 = vpop.f32.mrb[2].mxu0  ;;  %v365_v27 = vpop.f32.mrb[2].mxu1 }
  0xfc   :  { %v342_v28 = vpop.f32.mrb[3].mxu0  ;;  %v366_v29 = vpop.f32.mrb[3].mxu1 }
  0xfd   :  { %v252_v30 = vadd.f32 %v659_v23, %v229_v24  ;;  %v260_v31 = vadd.f32 %v659_v23, %v237_v25  ;;  %v343_v32 = vadd.f32 %v342_v28, %v341_v26  ;;  %v367_v33 = vadd.f32 %v366_v29, %v365_v27 }
  0xff   :  { %v268_v34 = vmax.f32 %v252_v30, 0.0  ;;  %v276_v35 = vmax.f32 %v260_v31, 0.0  ;;  %v230_v36 = vmul.f32 %v343_v32, %v654_v19  ;;  %v238_v37 = vmul.f32 %v367_v33, %v654_v19  ;;  %v344_v38 = vpop.f32.mrb[4].mxu0  ;;  %v368_v39 = vpop.f32.mrb[4].mxu1 }
 0x100   :  { %v345_v40 = vpop.f32.mrb[5].mxu0  ;;  %v369_v41 = vpop.f32.mrb[5].mxu1 }
 0x101   :  { %285 = vst.msk [vmem:[%s761_s4] sm:$0xff] %vm284_vm0, %v268_v34  ;;  %293 = vst.msk [vmem:[%s761_s4 + $0x40] sm:$0xff] %vm284_vm0, %v276_v35  ;;  %v253_v42 = vadd.f32 %v659_v23, %v230_v36  ;;  %v261_v43 = vadd.f32 %v659_v23, %v238_v37  ;;  %v346_v44 = vadd.f32 %v345_v40, %v344_v38 }
 0x102   :  { %v370_v45 = vadd.f32 %v369_v41, %v368_v39 }
 0x103   :  { %v269_v46 = vmax.f32 %v253_v42, 0.0  ;;  %v277_v47 = vmax.f32 %v261_v43, 0.0  ;;  %v231_v48 = vmul.f32 %v346_v44, %v654_v19  ;;  %v347_v50 = vpop.f32.mrb[6].mxu0  ;;  %v371_v51 = vpop.f32.mrb[6].mxu1 }
 0x104   :  { %v239_v49 = vmul.f32 %v370_v45, %v654_v19  ;;  %v348_v52 = vpop.f32.mrb[7].mxu0  ;;  %v372_v53 = vpop.f32.mrb[7].mxu1 }
 0x105   :  { %286 = vst.msk [vmem:[%s761_s4 + $0x8] sm:$0xff] %vm284_vm0, %v269_v46  ;;  %294 = vst.msk [vmem:[%s761_s4 + $0x48] sm:$0xff] %vm284_vm0, %v277_v47  ;;  %v254_v54 = vadd.f32 %v659_v23, %v231_v48  ;;  %v349_v56 = vadd.f32 %v348_v52, %v347_v50  ;;  %v373_v57 = vadd.f32 %v372_v53, %v371_v51 }
 0x106   :  { %v262_v55 = vadd.f32 %v659_v23, %v239_v49 }
 0x107   :  { %v270_v58 = vmax.f32 %v254_v54, 0.0  ;;  %v232_v60 = vmul.f32 %v349_v56, %v654_v19  ;;  %v240_v61 = vmul.f32 %v373_v57, %v654_v19  ;;  %v350_v62 = vpop.f32.mrb[8].mxu0  ;;  %v374_v63 = vpop.f32.mrb[8].mxu1 }
 0x108   :  { %v278_v59 = vmax.f32 %v262_v55, 0.0  ;;  %v351_v0 = vpop.f32.mrb[9].mxu0  ;;  %v375_v1 = vpop.f32.mrb[9].mxu1 }
 0x109   :  { %287 = vst.msk [vmem:[%s761_s4 + $0x10] sm:$0xff] %vm284_vm0, %v270_v58  ;;  %v255_v2 = vadd.f32 %v659_v23, %v232_v60  ;;  %v263_v3 = vadd.f32 %v659_v23, %v240_v61  ;;  %v352_v4 = vadd.f32 %v351_v0, %v350_v62  ;;  %v376_v5 = vadd.f32 %v375_v1, %v374_v63 }
 0x10a   :  { %295 = vst.msk [vmem:[%s761_s4 + $0x50] sm:$0xff] %vm284_vm0, %v278_v59 }
 0x10b   :  { %v271_v6 = vmax.f32 %v255_v2, 0.0  ;;  %v279_v7 = vmax.f32 %v263_v3, 0.0  ;;  %v233_v8 = vmul.f32 %v352_v4, %v654_v19  ;;  %v241_v9 = vmul.f32 %v376_v5, %v654_v19  ;;  %v353_v10 = vpop.f32.mrb[10].mxu0  ;;  %v377_v11 = vpop.f32.mrb[10].mxu1 }
 0x10c   :  { %v354_v12 = vpop.f32.mrb[11].mxu0  ;;  %v378_v13 = vpop.f32.mrb[11].mxu1 }
 0x10d   :  { %288 = vst.msk [vmem:[%s761_s4 + $0x18] sm:$0xff] %vm284_vm0, %v271_v6  ;;  %296 = vst.msk [vmem:[%s761_s4 + $0x58] sm:$0xff] %vm284_vm0, %v279_v7  ;;  %v256_v14 = vadd.f32 %v659_v23, %v233_v8  ;;  %v264_v15 = vadd.f32 %v659_v23, %v241_v9  ;;  %v355_v16 = vadd.f32 %v354_v12, %v353_v10 }
 0x10e   :  { %v379_v17 = vadd.f32 %v378_v13, %v377_v11 }
 0x10f   :  { %v272_v18 = vmax.f32 %v256_v14, 0.0  ;;  %v280_v20 = vmax.f32 %v264_v15, 0.0  ;;  %v234_v21 = vmul.f32 %v355_v16, %v654_v19  ;;  %v356_v24 = vpop.f32.mrb[12].mxu0  ;;  %v380_v25 = vpop.f32.mrb[12].mxu1 }
 0x110   :  { %v242_v22 = vmul.f32 %v379_v17, %v654_v19  ;;  %v357_v26 = vpop.f32.mrb[13].mxu0  ;;  %v381_v27 = vpop.f32.mrb[13].mxu1 }
 0x111   :  { %289 = vst.msk [vmem:[%s761_s4 + $0x20] sm:$0xff] %vm284_vm0, %v272_v18  ;;  %297 = vst.msk [vmem:[%s761_s4 + $0x60] sm:$0xff] %vm284_vm0, %v280_v20  ;;  %v257_v28 = vadd.f32 %v659_v23, %v234_v21  ;;  %v358_v30 = vadd.f32 %v357_v26, %v356_v24  ;;  %v382_v31 = vadd.f32 %v381_v27, %v380_v25 }
 0x112   :  { %v265_v29 = vadd.f32 %v659_v23, %v242_v22 }
 0x113   :  { %v273_v32 = vmax.f32 %v257_v28, 0.0  ;;  %v235_v34 = vmul.f32 %v358_v30, %v654_v19  ;;  %v243_v35 = vmul.f32 %v382_v31, %v654_v19  ;;  %v359_v36 = vpop.f32.mrb[14].mxu0  ;;  %v383_v37 = vpop.f32.mrb[14].mxu1 }
 0x114   :  { %v281_v33 = vmax.f32 %v265_v29, 0.0  ;;  %v360_v38 = vpop.f32.mrb[15].mxu0  ;;  %v384_v39 = vpop.f32.mrb[15].mxu1 }
 0x115   :  { %290 = vst.msk [vmem:[%s761_s4 + $0x28] sm:$0xff] %vm284_vm0, %v273_v32  ;;  %v258_v40 = vadd.f32 %v659_v23, %v235_v34  ;;  %v266_v41 = vadd.f32 %v659_v23, %v243_v35  ;;  %v361_v42 = vadd.f32 %v360_v38, %v359_v36  ;;  %v385_v43 = vadd.f32 %v384_v39, %v383_v37 }
 0x116   :  { %298 = vst.msk [vmem:[%s761_s4 + $0x68] sm:$0xff] %vm284_vm0, %v281_v33 }
 0x117   :  { %v274_v44 = vmax.f32 %v258_v40, 0.0  ;;  %v282_v45 = vmax.f32 %v266_v41, 0.0  ;;  %v236_v46 = vmul.f32 %v361_v42, %v654_v19  ;;  %v244_v47 = vmul.f32 %v385_v43, %v654_v19 }
 0x119   :  { %291 = vst.msk [vmem:[%s761_s4 + $0x30] sm:$0xff] %vm284_vm0, %v274_v44  ;;  %299 = vst.msk [vmem:[%s761_s4 + $0x70] sm:$0xff] %vm284_vm0, %v282_v45  ;;  %v259_v48 = vadd.f32 %v659_v23, %v236_v46  ;;  %v267_v49 = vadd.f32 %v659_v23, %v244_v47 }
 0x11b   :  { %v275_v50 = vmax.f32 %v259_v48, 0.0  ;;  %v283_v51 = vmax.f32 %v267_v49, 0.0 }
 0x11d   :  { %292 = vst.msk [vmem:[%s761_s4 + $0x38] sm:$0xff] %vm284_vm0, %v275_v50  ;;  %300 = vst.msk [vmem:[%s761_s4 + $0x78] sm:$0xff] %vm284_vm0, %v283_v51 }

// kernel: a_call__.3
= control target key start
LH: loop header
LB: loop body
LE: loop exit
PB: predicated region body
PF: predicated region fallthrough
CT: control target
= control target key end

     0   :  { %vm2075_vm0 = vmmov 0   ;;  %vm390_vm1 = vcmask 523264   ;;  %vm1386_vm2 = vcmask 48128   ;;  %s2856_s1 = inlined_call_operand.vmem [shape: f32[512,64], index: 1, kind: input, shape index: {}]   ;;  %s2857_s0 = inlined_call_operand.vmem [shape: f32[72,512], index: 0, kind: input, shape index: {}]   ;;  %s2858_s3 = inlined_call_operand.vmem [shape: f32[576,64], index: 3, kind: input, shape index: {}]   ;;  %s2859_s2 = inlined_call_operand.vmem [shape: f32[1,64], index: 2, kind: input, shape index: {}, may-alias: {2,4,6,8}]   ;;  %s2860_s5 = inlined_call_operand.vmem [shape: f32[64,64], index: 5, kind: input, shape index: {}]   ;;  %s2861_s7 = inlined_call_operand.vmem [shape: f32[64,64], index: 7, kind: input, shape index: {}]   ;;  %s2862_s4 = inlined_call_operand.vmem [shape: f32[1,64], index: 4, kind: input, shape index: {}, may-alias: {2,4,6,8}]   ;;  %s2863_s9 = inlined_call_operand.vmem [shape: f32[64,6], index: 9, kind: input, shape index: {}]   ;;  %s2864_s6 = inlined_call_operand.vmem [shape: f32[1,64], index: 6, kind: input, shape index: {}, may-alias: {2,4,6,8}]   ;;  %s2865_s8 = inlined_call_operand.vmem [shape: f32[1,64], index: 8, kind: input, shape index: {}, may-alias: {2,4,6,8}]   ;;  %s2866_s10 = inlined_call_operand.vmem [shape: f32[1,6], index: 10, kind: input, shape index: {}]   ;;  %s2867_s11 = inlined_call_operand.vmem [shape: f32[8,6], index: 11, kind: output, shape index: {}]  }
   0x1   :  { %v90_v0 = vld [vmem:[%s2856_s1 + $0x80] sm:$0xff]  ;;  %v91_v1 = vld [vmem:[%s2856_s1 + $0x88] sm:$0xff]  ;;  %v92_v11 = vld [vmem:[%s2856_s1 + $0x90] sm:$0xff] }
   0x2   :  { %v74_v2 = vld [vmem:[%s2856_s1] sm:$0xff]  ;;  %v1863_v3 = vpack.c.bf16 %v91_v1, %v90_v0  ;;  %v75_v4 = vld [vmem:[%s2856_s1 + $0x8] sm:$0xff]  ;;  %v93_v13 = vld [vmem:[%s2856_s1 + $0x98] sm:$0xff] }
   0x3   :  { %v122_v5 = vld [vmem:[%s2856_s1 + $0x180] sm:$0xff]  ;;  %v123_v6 = vld [vmem:[%s2856_s1 + $0x188] sm:$0xff]  ;;  %v1865_v7 = vpack.c.bf16 %v75_v4, %v74_v2  ;;  %v76_v14 = vld [vmem:[%s2856_s1 + $0x10] sm:$0xff]  ;;  %v1867_v16 = vpack.c.bf16 %v93_v13, %v92_v11 }
   0x4   :  { %v1895_v8 = vpack.c.bf16 %v123_v6, %v122_v5  ;;  %v106_v9 = vld [vmem:[%s2856_s1 + $0x100] sm:$0xff]  ;;  %v107_v10 = vld [vmem:[%s2856_s1 + $0x108] sm:$0xff]  ;;  %1864 = vmatprep.subr.bf16.mxu0 %v1863_v3  ;;  %v77_v15 = vld [vmem:[%s2856_s1 + $0x18] sm:$0xff] }
   0x5   :  { %v1897_v12 = vpack.c.bf16 %v107_v10, %v106_v9  ;;  %1866 = vmatpush3.bf16.msra.mxu0 %v1865_v7  ;;  %v1869_v17 = vpack.c.bf16 %v77_v15, %v76_v14  ;;  %v124_v18 = vld [vmem:[%s2856_s1 + $0x190] sm:$0xff]  ;;  %v125_v19 = vld [vmem:[%s2856_s1 + $0x198] sm:$0xff]  ;;  %v94_v23 = vld [vmem:[%s2856_s1 + $0xa0] sm:$0xff] }
   0x6   :  { %1896 = vmatprep.subr.bf16.mxu1 %v1895_v8  ;;  %v108_v20 = vld [vmem:[%s2856_s1 + $0x110] sm:$0xff]  ;;  %v1899_v21 = vpack.c.bf16 %v125_v19, %v124_v18  ;;  %v109_v22 = vld [vmem:[%s2856_s1 + $0x118] sm:$0xff]  ;;  %v95_v24 = vld [vmem:[%s2856_s1 + $0xa8] sm:$0xff]  ;;  %1868 = vmatprep.subr.bf16.mxu0 %v1867_v16 }
   0x7   :  { %1898 = vmatpush3.bf16.msra.mxu1 %v1897_v12  ;;  %v1901_v25 = vpack.c.bf16 %v109_v22, %v108_v20  ;;  %v1871_v26 = vpack.c.bf16 %v95_v24, %v94_v23  ;;  %v78_v27 = vld [vmem:[%s2856_s1 + $0x20] sm:$0xff]  ;;  %v79_v28 = vld [vmem:[%s2856_s1 + $0x28] sm:$0xff]  ;;  %v96_v35 = vld [vmem:[%s2856_s1 + $0xb0] sm:$0xff] }
   0x8   :  { %v126_v29 = vld [vmem:[%s2856_s1 + $0x1a0] sm:$0xff]  ;;  %1900 = vmatprep.subr.bf16.mxu1 %v1899_v21  ;;  %v127_v30 = vld [vmem:[%s2856_s1 + $0x1a8] sm:$0xff]  ;;  %v1873_v33 = vpack.c.bf16 %v79_v28, %v78_v27  ;;  %v97_v36 = vld [vmem:[%s2856_s1 + $0xb8] sm:$0xff] }
   0x9   :  { %v110_v31 = vld [vmem:[%s2856_s1 + $0x120] sm:$0xff]  ;;  %v111_v32 = vld [vmem:[%s2856_s1 + $0x128] sm:$0xff]  ;;  %1870 = vmatpush3.bf16.msra.mxu0 %v1869_v17  ;;  %v1903_v34 = vpack.c.bf16 %v127_v30, %v126_v29  ;;  %v80_v37 = vld [vmem:[%s2856_s1 + $0x30] sm:$0xff]  ;;  %v1875_v39 = vpack.c.bf16 %v97_v36, %v96_v35 }
   0xa   :  { %1872 = vmatprep.subr.bf16.mxu0 %v1871_v26  ;;  %v1905_v38 = vpack.c.bf16 %v111_v32, %v110_v31  ;;  %v81_v40 = vld [vmem:[%s2856_s1 + $0x38] sm:$0xff]  ;;  %v128_v41 = vld [vmem:[%s2856_s1 + $0x1b0] sm:$0xff]  ;;  %v98_v46 = vld [vmem:[%s2856_s1 + $0xc0] sm:$0xff] }
   0xb   :  { %1902 = vmatpush3.bf16.msra.mxu1 %v1901_v25  ;;  %v129_v42 = vld [vmem:[%s2856_s1 + $0x1b8] sm:$0xff]  ;;  %v112_v44 = vld [vmem:[%s2856_s1 + $0x130] sm:$0xff]  ;;  %v99_v47 = vld [vmem:[%s2856_s1 + $0xc8] sm:$0xff]  ;;  %v1877_v48 = vpack.c.bf16 %v81_v40, %v80_v37 }
   0xc   :  { %1904 = vmatprep.subr.bf16.mxu1 %v1903_v34  ;;  %v1907_v43 = vpack.c.bf16 %v129_v42, %v128_v41  ;;  %v113_v45 = vld [vmem:[%s2856_s1 + $0x138] sm:$0xff]  ;;  %v130_v49 = vld [vmem:[%s2856_s1 + $0x1c0] sm:$0xff]  ;;  %v131_v50 = vld [vmem:[%s2856_s1 + $0x1c8] sm:$0xff]  ;;  %v1879_v52 = vpack.c.bf16 %v99_v47, %v98_v46 }
   0xd   :  { %1874 = vmatpush3.bf16.msra.mxu0 %v1873_v33  ;;  %v1909_v51 = vpack.c.bf16 %v113_v45, %v112_v44  ;;  %v82_v53 = vld [vmem:[%s2856_s1 + $0x40] sm:$0xff]  ;;  %v83_v54 = vld [vmem:[%s2856_s1 + $0x48] sm:$0xff]  ;;  %v1911_v56 = vpack.c.bf16 %v131_v50, %v130_v49  ;;  %v100_v58 = vld [vmem:[%s2856_s1 + $0xd0] sm:$0xff] }
   0xe   :  { %1876 = vmatprep.subr.bf16.mxu0 %v1875_v39  ;;  %v114_v55 = vld [vmem:[%s2856_s1 + $0x140] sm:$0xff]  ;;  %v115_v57 = vld [vmem:[%s2856_s1 + $0x148] sm:$0xff]  ;;  %v101_v59 = vld [vmem:[%s2856_s1 + $0xd8] sm:$0xff]  ;;  %v1881_v62 = vpack.c.bf16 %v83_v54, %v82_v53 }
   0xf   :  { %1906 = vmatpush3.bf16.msra.mxu1 %v1905_v38  ;;  %v132_v60 = vld [vmem:[%s2856_s1 + $0x1d0] sm:$0xff]  ;;  %v133_v61 = vld [vmem:[%s2856_s1 + $0x1d8] sm:$0xff]  ;;  %v1913_v63 = vpack.c.bf16 %v115_v57, %v114_v55  ;;  %v1883_v0 = vpack.c.bf16 %v101_v59, %v100_v58  ;;  %v102_v6 = vld [vmem:[%s2856_s1 + $0xe0] sm:$0xff]  ;;  %v2074_v38 = vmov 0.0|0.0  }
  0x10   :  { %1908 = vmatprep.subr.bf16.mxu1 %v1907_v43  ;;  %v84_v1 = vld [vmem:[%s2856_s1 + $0x50] sm:$0xff]  ;;  %v85_v2 = vld [vmem:[%s2856_s1 + $0x58] sm:$0xff]  ;;  %v1915_v4 = vpack.c.bf16 %v133_v61, %v132_v60  ;;  %v103_v7 = vld [vmem:[%s2856_s1 + $0xe8] sm:$0xff] }
  0x11   :  { %1878 = vmatpush3.bf16.msra.mxu0 %v1877_v48  ;;  %v116_v3 = vld [vmem:[%s2856_s1 + $0x150] sm:$0xff]  ;;  %v117_v5 = vld [vmem:[%s2856_s1 + $0x158] sm:$0xff]  ;;  %v134_v8 = vld [vmem:[%s2856_s1 + $0x1e0] sm:$0xff]  ;;  %v1885_v10 = vpack.c.bf16 %v85_v2, %v84_v1  ;;  %v1887_v14 = vpack.c.bf16 %v103_v7, %v102_v6 }
  0x12   :  { %1880 = vmatprep.subr.bf16.mxu0 %v1879_v52  ;;  %v135_v9 = vld [vmem:[%s2856_s1 + $0x1e8] sm:$0xff]  ;;  %v86_v11 = vld [vmem:[%s2856_s1 + $0x60] sm:$0xff]  ;;  %v1917_v13 = vpack.c.bf16 %v117_v5, %v116_v3  ;;  %v104_v19 = vld [vmem:[%s2856_s1 + $0xf0] sm:$0xff] }
  0x13   :  { %1910 = vmatpush3.bf16.msra.mxu1 %v1909_v51  ;;  %v87_v12 = vld [vmem:[%s2856_s1 + $0x68] sm:$0xff]  ;;  %v118_v15 = vld [vmem:[%s2856_s1 + $0x160] sm:$0xff]  ;;  %v1919_v18 = vpack.c.bf16 %v135_v9, %v134_v8  ;;  %v105_v20 = vld [vmem:[%s2856_s1 + $0xf8] sm:$0xff] }
  0x14   :  { %1912 = vmatprep.subr.bf16.mxu1 %v1911_v56  ;;  %v119_v16 = vld [vmem:[%s2856_s1 + $0x168] sm:$0xff]  ;;  %v41_v21 = vld [vmem:[%s2857_s0 + $0x18] sm:$0xff]  ;;  %v136_v22 = vld [vmem:[%s2856_s1 + $0x1f0] sm:$0xff]  ;;  %v1889_v24 = vpack.c.bf16 %v87_v12, %v86_v11  ;;  %v1891_v26 = vpack.c.bf16 %v105_v20, %v104_v19 }
  0x15   :  { %1882 = vmatpush3.bf16.msra.mxu0 %v1881_v62  ;;  %v39_v17 = vld [vmem:[%s2857_s0 + $0x8] sm:$0xff]  ;;  %v137_v23 = vld [vmem:[%s2856_s1 + $0x1f8] sm:$0xff]  ;;  %319 = vmatprep.mubr.f32.mxu1 %v41_v21  ;;  %v1921_v25 = vpack.c.bf16 %v119_v16, %v118_v15  ;;  %v88_v27 = vld [vmem:[%s2856_s1 + $0x70] sm:$0xff] }
  0x16   :  { %1884 = vmatprep.subr.bf16.mxu0 %v1883_v0  ;;  %209 = vmatprep.mubr.f32.mxu0 %v39_v17  ;;  %v89_v28 = vld [vmem:[%s2856_s1 + $0x78] sm:$0xff]  ;;  %v1923_v29 = vpack.c.bf16 %v137_v23, %v136_v22  ;;  %v120_v30 = vld [vmem:[%s2856_s1 + $0x170] sm:$0xff]  ;;  %v38_v34 = vld [vmem:[%s2857_s0] sm:$0xff] }
  0x17   :  { %1914 = vmatpush3.bf16.msra.mxu1 %v1913_v63  ;;  %v121_v31 = vld [vmem:[%s2856_s1 + $0x178] sm:$0xff]  ;;  %v1893_v32 = vpack.c.bf16 %v89_v28, %v88_v27  ;;  %v40_v35 = vld [vmem:[%s2857_s0 + $0x10] sm:$0xff]  ;;  %v43_v36 = vld [vmem:[%s2857_s0 + $0x28] sm:$0xff] }
  0x18   :  { %1916 = vmatprep.subr.bf16.mxu1 %v1915_v4  ;;  %v1925_v33 = vpack.c.bf16 %v121_v31, %v120_v30  ;;  %v45_v37 = vld [vmem:[%s2857_s0 + $0x38] sm:$0xff]  ;;  %v382_v39 = vld [vmem:[%s2858_s3 + $0x40] sm:$0xff]  ;;  %v383_v40 = vld [vmem:[%s2858_s3 + $0x48] sm:$0xff] }
  0x19   :  { %1886 = vmatpush3.bf16.msra.mxu0 %v1885_v10  ;;  %v1928_v41 = vpack.c.bf16 %v383_v40, %v382_v39  ;;  %v384_v42 = vld [vmem:[%s2858_s3 + $0x50] sm:$0xff]  ;;  %v385_v43 = vld [vmem:[%s2858_s3 + $0x58] sm:$0xff]  ;;  %v374_v44 = vld [vmem:[%s2858_s3] sm:$0xff] }
  0x1a   :  { %1888 = vmatprep.subr.bf16.mxu0 %v1887_v14  ;;  %v375_v45 = vld [vmem:[%s2858_s3 + $0x8] sm:$0xff]  ;;  %v42_v46 = vld [vmem:[%s2857_s0 + $0x20] sm:$0xff]  ;;  %v376_v48 = vld [vmem:[%s2858_s3 + $0x10] sm:$0xff]  ;;  %v1931_v52 = vpack.c.bf16 %v385_v43, %v384_v42 }
  0x1b   :  { %1918 = vmatpush3.bf16.msra.mxu1 %v1917_v13  ;;  %v1940_v47 = vpack.c.bf16 %v375_v45, %v374_v44  ;;  %v377_v49 = vld [vmem:[%s2858_s3 + $0x18] sm:$0xff]  ;;  %v44_v50 = vld [vmem:[%s2857_s0 + $0x30] sm:$0xff]  ;;  %v47_v51 = vld [vmem:[%s2857_s0 + $0x48] sm:$0xff] }
  0x1c   :  { %1920 = vmatprep.subr.bf16.mxu1 %v1919_v18  ;;  %v49_v53 = vld [vmem:[%s2857_s0 + $0x58] sm:$0xff]  ;;  %v386_v54 = vld [vmem:[%s2858_s3 + $0x60] sm:$0xff]  ;;  %v387_v55 = vld [vmem:[%s2858_s3 + $0x68] sm:$0xff]  ;;  %v1943_v56 = vpack.c.bf16 %v377_v49, %v376_v48 }
  0x1d   :  { %1890 = vmatpush3.bf16.msra.mxu0 %v1889_v24  ;;  %v46_v57 = vld [vmem:[%s2857_s0 + $0x40] sm:$0xff]  ;;  %v48_v58 = vld [vmem:[%s2857_s0 + $0x50] sm:$0xff]  ;;  %v51_v59 = vld [vmem:[%s2857_s0 + $0x68] sm:$0xff]  ;;  %v1934_v60 = vpack.c.bf16 %v387_v55, %v386_v54 }
  0x1e   :  { %1892 = vmatprep.subr.bf16.mxu0 %v1891_v26  ;;  %v53_v61 = vld [vmem:[%s2857_s0 + $0x78] sm:$0xff]  ;;  %v50_v62 = vld [vmem:[%s2857_s0 + $0x60] sm:$0xff]  ;;  %v52_v63 = vld [vmem:[%s2857_s0 + $0x70] sm:$0xff] }
  0x1f   :  { %1922 = vmatpush3.bf16.msra.mxu1 %v1921_v25  ;;  %v55_v0 = vld [vmem:[%s2857_s0 + $0x88] sm:$0xff]  ;;  %v57_v1 = vld [vmem:[%s2857_s0 + $0x98] sm:$0xff]  ;;  %v54_v2 = vld [vmem:[%s2857_s0 + $0x80] sm:$0xff] }
  0x20   :  { %1924 = vmatprep.subr.bf16.mxu1 %v1923_v29  ;;  %v56_v3 = vld [vmem:[%s2857_s0 + $0x90] sm:$0xff]  ;;  %v59_v4 = vld [vmem:[%s2857_s0 + $0xa8] sm:$0xff]  ;;  %v61_v5 = vld [vmem:[%s2857_s0 + $0xb8] sm:$0xff]  ;;  %v2076_v29 = vmov 0.0  }
  0x21   :  { %1894 = vmatpush3.bf16.msra.mxu0 %v1893_v32  ;;  %v58_v6 = vld [vmem:[%s2857_s0 + $0xa0] sm:$0xff]  ;;  %v60_v7 = vld [vmem:[%s2857_s0 + $0xb0] sm:$0xff]  ;;  %v63_v8 = vld [vmem:[%s2857_s0 + $0xc8] sm:$0xff] }
  0x22   :  { %1927 = vmatprep.subr.bf16.mxu0 %v2074_v38  ;;  %v65_v9 = vld [vmem:[%s2857_s0 + $0xd8] sm:$0xff]  ;;  %v62_v10 = vld [vmem:[%s2857_s0 + $0xc0] sm:$0xff]  ;;  %v64_v11 = vld [vmem:[%s2857_s0 + $0xd0] sm:$0xff] }
  0x23   :  { %1926 = vmatpush3.bf16.msra.mxu1 %v1925_v33  ;;  %v67_v12 = vld [vmem:[%s2857_s0 + $0xe8] sm:$0xff]  ;;  %v69_v13 = vld [vmem:[%s2857_s0 + $0xf8] sm:$0xff]  ;;  %v66_v14 = vld [vmem:[%s2857_s0 + $0xe0] sm:$0xff] }
  0x24   :  { %1939 = vmatprep.subr.bf16.mxu1 %v2074_v38  ;;  %210 = vmatmul.mubr.f32.vlgmr.msra.gmra.mrb[0].mxu0 %v38_v34  ;;  %v68_v15 = vld [vmem:[%s2857_s0 + $0xf0] sm:$0xff]  ;;  %v71_v16 = vld [vmem:[%s2857_s0 + $0x108] sm:$0xff]  ;;  %v73_v17 = vld [vmem:[%s2857_s0 + $0x118] sm:$0xff] }
  0x25   :  { %214 = vmatprep.mubr.f32.mxu0 %v43_v36  ;;  %1929 = vmatpush3.bf16.msra.mxu0 %v1928_v41  ;;  %v70_v18 = vld [vmem:[%s2857_s0 + $0x100] sm:$0xff]  ;;  %v72_v19 = vld [vmem:[%s2857_s0 + $0x110] sm:$0xff]  ;;  %v379_v21 = vld [vmem:[%s2858_s3 + $0x28] sm:$0xff] }
  0x26   :  { %320 = vmatmul.mubr.f32.vlgmr.msra.gmra.mrb[0].mxu1 %v40_v35  ;;  %1930 = vmatprep.subr.bf16.mxu0 %v2074_v38  ;;  %v378_v20 = vld [vmem:[%s2858_s3 + $0x20] sm:$0xff]  ;;  %v380_v23 = vld [vmem:[%s2858_s3 + $0x30] sm:$0xff]  ;;  %v381_v24 = vld [vmem:[%s2858_s3 + $0x38] sm:$0xff] }
  0x27   :  { %324 = vmatprep.mubr.f32.mxu1 %v45_v37  ;;  %1941 = vmatpush3.bf16.msra.mxu1 %v1940_v47  ;;  %v1946_v22 = vpack.c.bf16 %v379_v21, %v378_v20  ;;  %v1949_v25 = vpack.c.bf16 %v381_v24, %v380_v23  ;;  %v388_v26 = vld [vmem:[%s2858_s3 + $0x70] sm:$0xff]  ;;  %v389_v27 = vld [vmem:[%s2858_s3 + $0x78] sm:$0xff]  ;;  %v2502_v31 = vld [vmem:[%s2859_s2] ss:$0 sm:$0xff] }
  0x28   :  { %215 = vmatmul.mubr.f32.gmra.mrb[2].mxu0 %v42_v46  ;;  %1942 = vmatprep.subr.bf16.mxu1 %v2074_v38  ;;  %v1937_v28 = vpack.c.bf16 %v389_v27, %v388_v26  ;;  %v619_v40 = vld [vmem:[%s2858_s3 + $0xc0] sm:$0xff]  ;;  %v620_v41 = vld [vmem:[%s2858_s3 + $0xc8] sm:$0xff]  ;;  %v621_v54 = vld [vmem:[%s2858_s3 + $0xd0] sm:$0xff] }
  0x29   :  { %219 = vmatprep.mubr.f32.mxu0 %v47_v51  ;;  %1932 = vmatpush3.bf16.msra.mxu0 %v1931_v52  ;;  %v537_v48 = vld [vmem:[%s2858_s3 + $0x80] sm:$0xff]  ;;  %v1964_v49 = vpack.c.bf16 %v620_v41, %v619_v40  ;;  %v538_v52 = vld [vmem:[%s2858_s3 + $0x88] sm:$0xff]  ;;  %v622_v55 = vld [vmem:[%s2858_s3 + $0xd8] sm:$0xff] }
  0x2a   :  { %325 = vmatmul.mubr.f32.gmra.mrb[2].mxu1 %v44_v50  ;;  %1933 = vmatprep.subr.bf16.mxu0 %v2074_v38  ;;  %v543_v27 = vld [vmem:[%s2858_s3 + $0xb0] sm:$0xff] }
  0x2b   :  { %329 = vmatprep.mubr.f32.mxu1 %v49_v53  ;;  %1944 = vmatpush3.bf16.msra.mxu1 %v1943_v56 }
  0x2c   :  { %220 = vmatmul.mubr.f32.gmra.mrb[4].mxu0 %v46_v57  ;;  %1945 = vmatprep.subr.bf16.mxu1 %v2074_v38 }
  0x2d   :  { %224 = vmatprep.mubr.f32.mxu0 %v51_v59  ;;  %1935 = vmatpush3.bf16.msra.mxu0 %v1934_v60 }
  0x2e   :  { %330 = vmatmul.mubr.f32.gmra.mrb[4].mxu1 %v48_v58  ;;  %1936 = vmatprep.subr.bf16.mxu0 %v2074_v38 }
  0x2f   :  { %334 = vmatprep.mubr.f32.mxu1 %v53_v61  ;;  %1947 = vmatpush3.bf16.msra.mxu1 %v1946_v22  ;;  %v1952_v61 = vpack.c.bf16 %v538_v52, %v537_v48  ;;  %v702_v48 = vld [vmem:[%s2858_s3 + $0x108] sm:$0xff] }
  0x30   :  { %225 = vmatmul.mubr.f32.gmra.mrb[6].mxu0 %v50_v62  ;;  %1948 = vmatprep.subr.bf16.mxu1 %v2074_v38  ;;  %v539_v62 = vld [vmem:[%s2858_s3 + $0x90] sm:$0xff] }
  0x31   :  { %229 = vmatprep.mubr.f32.mxu0 %v55_v0  ;;  %1938 = vmatpush3.bf16.msra.mxu0 %v1937_v28 }
  0x32   :  { %335 = vmatmul.mubr.f32.gmra.mrb[6].mxu1 %v52_v63  ;;  %1951 = vmatprep.subr.bf16.mxu0 %v2074_v38  ;;  %v1967_v63 = vpack.c.bf16 %v622_v55, %v621_v54 }
  0x33   :  { %339 = vmatprep.mubr.f32.mxu1 %v57_v1  ;;  %1950 = vmatpush3.bf16.msra.mxu1 %v1949_v25 }
  0x34   :  { %230 = vmatmul.mubr.f32.gmra.mrb[8].mxu0 %v54_v2  ;;  %1963 = vmatprep.subr.bf16.mxu1 %v2074_v38  ;;  %v540_v2 = vld [vmem:[%s2858_s3 + $0x98] sm:$0xff] }
  0x35   :  { %234 = vmatprep.mubr.f32.mxu0 %v59_v4 }
  0x36   :  { %340 = vmatmul.mubr.f32.gmra.mrb[8].mxu1 %v56_v3 }
  0x37   :  { %344 = vmatprep.mubr.f32.mxu1 %v61_v5  ;;  %v623_v5 = vld [vmem:[%s2858_s3 + $0xe0] sm:$0xff] }
  0x38   :  { %235 = vmatmul.mubr.f32.gmra.mrb[10].mxu0 %v58_v6  ;;  %v624_v6 = vld [vmem:[%s2858_s3 + $0xe8] sm:$0xff] }
  0x39   :  { %239 = vmatprep.mubr.f32.mxu0 %v63_v8 }
  0x3a   :  { %345 = vmatmul.mubr.f32.gmra.mrb[10].mxu1 %v60_v7 }
  0x3b   :  { %349 = vmatprep.mubr.f32.mxu1 %v65_v9 }
  0x3c   :  { %240 = vmatmul.mubr.f32.gmra.mrb[12].mxu0 %v62_v10 }
  0x3d   :  { %244 = vmatprep.mubr.f32.mxu0 %v67_v12  ;;  %v1955_v12 = vpack.c.bf16 %v540_v2, %v539_v62 }
  0x3e   :  { %350 = vmatmul.mubr.f32.gmra.mrb[12].mxu1 %v64_v11 }
  0x3f   :  { %354 = vmatprep.mubr.f32.mxu1 %v69_v13  ;;  %v541_v13 = vld [vmem:[%s2858_s3 + $0xa0] sm:$0xff] }
  0x40   :  { %245 = vmatmul.mubr.f32.gmra.mrb[14].mxu0 %v66_v14 }
  0x41   :  { %249 = vmatprep.mubr.f32.mxu0 %v71_v16 }
  0x42   :  { %355 = vmatmul.mubr.f32.gmra.mrb[14].mxu1 %v68_v15  ;;  %v1970_v15 = vpack.c.bf16 %v624_v6, %v623_v5 }
  0x43   :  { %359 = vmatprep.mubr.f32.mxu1 %v73_v17  ;;  %v542_v17 = vld [vmem:[%s2858_s3 + $0xa8] sm:$0xff] }
  0x44   :  { %250 = vmatmul.mubr.f32.gmra.mrb[16].mxu0 %v70_v18  ;;  %v625_v18 = vld [vmem:[%s2858_s3 + $0xf0] sm:$0xff]  ;;  %v1958_v26 = vpack.c.bf16 %v542_v17, %v541_v13  ;;  %v706_v13 = vld [vmem:[%s2858_s3 + $0x128] sm:$0xff] }
  0x45   :  { %1651 = vmatprep.mubr.msk.f32.mxu0 %vm2075_vm0, %v2076_v29 }
  0x46   :  { %360 = vmatmul.mubr.f32.gmra.mrb[16].mxu1 %v72_v19  ;;  %v626_v19 = vld [vmem:[%s2858_s3 + $0xf8] sm:$0xff] }
  0x47   :  { %1670 = vmatprep.mubr.msk.f32.mxu1 %vm2075_vm0, %v2076_v29  ;;  %v1973_v28 = vpack.c.bf16 %v626_v19, %v625_v18 }
  0xf7   :  { %v1441_v30 = vpop.f32.mrb[0].mxu0 }
  0xf8   :  { %v1442_v32 = vpop.f32.mrb[1].mxu0 }
  0xf9   :  { %v1500_v33 = vpop.f32.mrb[0].mxu1  ;;  %v1443_v34 = vadd.f32 %v1442_v32, %v1441_v30  ;;  %v544_v32 = vld [vmem:[%s2858_s3 + $0xb8] sm:$0xff] }
  0xfa   :  { %v1501_v35 = vpop.f32.mrb[1].mxu1 }
  0xfb   :  { %v1502_v36 = vadd.f32 %v1501_v35, %v1500_v33  ;;  %v212_v37 = vadd.f32 %v1443_v34, %v2502_v31  ;;  %v1444_v39 = vpop.f32.mrb[2].mxu0  ;;  %v783_v33 = vld [vmem:[%s2858_s3 + $0x140] sm:$0xff]  ;;  %v784_v34 = vld [vmem:[%s2858_s3 + $0x148] sm:$0xff] }
  0xfc   :  { %v1445_v42 = vpop.f32.mrb[3].mxu0 }
  0xfd   :  { %v1503_v43 = vpop.f32.mrb[2].mxu1  ;;  %v322_v44 = vadd.f32 %v1502_v36, %v212_v37  ;;  %v1446_v45 = vadd.f32 %v1445_v42, %v1444_v39 }
  0xfe   :  { %v1504_v46 = vpop.f32.mrb[3].mxu1 }
  0xff   :  { %v1505_v47 = vadd.f32 %v1504_v46, %v1503_v43  ;;  %v365_v50 = vmax.f32 %v322_v44, 0.0  ;;  %v217_v51 = vadd.f32 %v1446_v45, %v2502_v31  ;;  %v1447_v53 = vpop.f32.mrb[4].mxu0  ;;  %v1961_v44 = vpack.c.bf16 %v544_v32, %v543_v27  ;;  %v701_v45 = vld [vmem:[%s2858_s3 + $0x100] sm:$0xff]  ;;  %v708_v27 = vld [vmem:[%s2858_s3 + $0x138] sm:$0xff] }
 0x100   :  { %v1448_v56 = vpop.f32.mrb[5].mxu0  ;;  %v1988_v46 = vpack.c.bf16 %v784_v34, %v783_v33 }
 0x101   :  { %v1506_v57 = vpop.f32.mrb[4].mxu1  ;;  %v327_v58 = vadd.f32 %v1505_v47, %v217_v51  ;;  %1671 = vmatmul.mubr.msk.f32.vlgmr.msra.gmra.mrb[18].mxu1 %vm390_vm1, %v365_v50  ;;  %v1449_v59 = vadd.f32 %v1448_v56, %v1447_v53  ;;  %v786_v50 = vld [vmem:[%s2858_s3 + $0x158] sm:$0xff] }
 0x102   :  { %v1507_v60 = vpop.f32.mrb[5].mxu1  ;;  %1965 = vmatpush3.bf16.msra.mxu1 %v1964_v49  ;;  %1708 = vmatprep.mubr.msk.f32.mxu1 %vm2075_vm0, %v2076_v29  ;;  %v785_v49 = vld [vmem:[%s2858_s3 + $0x150] sm:$0xff] }
 0x103   :  { %v1508_v0 = vadd.f32 %v1507_v60, %v1506_v57  ;;  %v366_v1 = vmax.f32 %v327_v58, 0.0  ;;  %1966 = vmatprep.subr.bf16.mxu1 %v2074_v38  ;;  %v222_v3 = vadd.f32 %v1449_v59, %v2502_v31  ;;  %v1450_v4 = vpop.f32.mrb[6].mxu0  ;;  %v1976_v59 = vpack.c.bf16 %v702_v48, %v701_v45  ;;  %v703_v60 = vld [vmem:[%s2858_s3 + $0x110] sm:$0xff] }
 0x104   :  { %v1451_v7 = vpop.f32.mrb[7].mxu0 }
 0x105   :  { %v1509_v8 = vpop.f32.mrb[6].mxu1  ;;  %1652 = vmatmul.mubr.msk.f32.vlgmr.msra.gmra.mrb[18].mxu0 %vm390_vm1, %v366_v1  ;;  %v1452_v9 = vadd.f32 %v1451_v7, %v1450_v4  ;;  %v2542_v10 = vadd.f32 %v1508_v0, %v222_v3  ;;  %v787_v0 = vld [vmem:[%s2858_s3 + $0x160] sm:$0xff]  ;;  %v788_v1 = vld [vmem:[%s2858_s3 + $0x168] sm:$0xff] }
 0x106   :  { %v1510_v11 = vpop.f32.mrb[7].mxu1  ;;  %1953 = vmatpush3.bf16.msra.mxu0 %v1952_v61  ;;  %1968 = vmatpush3.bf16.msra.mxu1 %v1967_v63  ;;  %v1991_v61 = vpack.c.bf16 %v786_v50, %v785_v49  ;;  %v704_v63 = vld [vmem:[%s2858_s3 + $0x118] sm:$0xff]  ;;  %v869_v49 = vld [vmem:[%s2858_s3 + $0x1a0] sm:$0xff] }
 0x107   :  { %v1511_v14 = vadd.f32 %v1510_v11, %v1509_v8  ;;  %1954 = vmatprep.subr.bf16.mxu0 %v2074_v38  ;;  %v227_v16 = vadd.f32 %v1452_v9, %v2502_v31  ;;  %1969 = vmatprep.subr.bf16.mxu1 %v2074_v38  ;;  %v1453_v20 = vpop.f32.mrb[8].mxu0  ;;  %v367_v55 = vmax.f32 %v2542_v10, 0.0  ;;  %v1979_v9 = vpack.c.bf16 %v704_v63, %v703_v60  ;;  %v705_v10 = vld [vmem:[%s2858_s3 + $0x120] sm:$0xff] }
 0x108   :  { %1689 = vmatprep.mubr.msk.f32.mxu0 %vm2075_vm0, %v2076_v29  ;;  %v1454_v21 = vpop.f32.mrb[9].mxu0  ;;  %v1994_v11 = vpack.c.bf16 %v788_v1, %v787_v0  ;;  %v1029_v60 = vld [vmem:[%s2858_s3 + $0x200] sm:$0xff]  ;;  %v1031_v0 = vld [vmem:[%s2858_s3 + $0x210] sm:$0xff]  ;;  %v1032_v1 = vld [vmem:[%s2858_s3 + $0x218] sm:$0xff] }
 0x109   :  { %v1512_v22 = vpop.f32.mrb[8].mxu1  ;;  %v337_v23 = vadd.f32 %v1511_v14, %v227_v16  ;;  %v1455_v24 = vadd.f32 %v1454_v21, %v1453_v20  ;;  %v789_v14 = vld [vmem:[%s2858_s3 + $0x170] sm:$0xff] }
 0x10a   :  { %v1513_v25 = vpop.f32.mrb[9].mxu1  ;;  %1956 = vmatpush3.bf16.msra.mxu0 %v1955_v12  ;;  %1971 = vmatpush3.bf16.msra.mxu1 %v1970_v15  ;;  %v790_v15 = vld [vmem:[%s2858_s3 + $0x178] sm:$0xff] }
 0x10b   :  { %v1514_v30 = vadd.f32 %v1513_v25, %v1512_v22  ;;  %1957 = vmatprep.subr.bf16.mxu0 %v2074_v38  ;;  %1972 = vmatprep.subr.bf16.mxu1 %v2074_v38  ;;  %v232_v35 = vadd.f32 %v1455_v24, %v2502_v31  ;;  %v1456_v36 = vpop.f32.mrb[10].mxu0  ;;  %v368_v40 = vmax.f32 %v337_v23, 0.0  ;;  %v1982_v23 = vpack.c.bf16 %v706_v13, %v705_v10  ;;  %v707_v24 = vld [vmem:[%s2858_s3 + $0x130] sm:$0xff]  ;;  %v1120_v10 = vld [vmem:[%s2860_s5] sm:$0xff] }
 0x10c   :  { %v1457_v37 = vpop.f32.mrb[11].mxu0  ;;  %v1997_v25 = vpack.c.bf16 %v790_v15, %v789_v14  ;;  %v1123_v14 = vld [vmem:[%s2860_s5 + $0x18] sm:$0xff] }
 0x10d   :  { %v1515_v39 = vpop.f32.mrb[10].mxu1  ;;  %v1458_v41 = vadd.f32 %v1457_v37, %v1456_v36  ;;  %v2576_v42 = vadd.f32 %v1514_v30, %v232_v35  ;;  %v948_v30 = vld [vmem:[%s2858_s3 + $0x1c8] sm:$0xff]  ;;  %v1985_v35 = vpack.c.bf16 %v708_v27, %v707_v24  ;;  %v865_v36 = vld [vmem:[%s2858_s3 + $0x180] sm:$0xff]  ;;  %v1211_v24 = vld [vmem:[%s2861_s7 + $0x10] sm:$0xff] }
 0x10e   :  { %v1516_v43 = vpop.f32.mrb[11].mxu1  ;;  %1959 = vmatpush3.bf16.msra.mxu0 %v1958_v26  ;;  %1974 = vmatpush3.bf16.msra.mxu1 %v1973_v28  ;;  %v947_v28 = vld [vmem:[%s2858_s3 + $0x1c0] sm:$0xff] }
 0x10f   :  { %v1517_v47 = vadd.f32 %v1516_v43, %v1515_v39  ;;  %1960 = vmatprep.subr.bf16.mxu0 %v2074_v38  ;;  %1987 = vmatprep.subr.bf16.mxu1 %v2074_v38  ;;  %v237_v51 = vadd.f32 %v1458_v41, %v2502_v31  ;;  %v1459_v52 = vpop.f32.mrb[12].mxu0  ;;  %v2012_v37 = vpack.c.bf16 %v948_v30, %v947_v28  ;;  %v866_v39 = vld [vmem:[%s2858_s3 + $0x188] sm:$0xff]  ;;  %v369_v41 = vmax.f32 %v2576_v42, 0.0  ;;  %v951_v42 = vld [vmem:[%s2858_s3 + $0x1e0] sm:$0xff] }
 0x110   :  { %v1460_v53 = vpop.f32.mrb[13].mxu0  ;;  %v2000_v43 = vpack.c.bf16 %v866_v39, %v865_v36  ;;  %v1213_v28 = vld [vmem:[%s2861_s7 + $0x20] sm:$0xff]  ;;  %v1214_v30 = vld [vmem:[%s2861_s7 + $0x28] sm:$0xff] }
 0x111   :  { %v1518_v54 = vpop.f32.mrb[12].mxu1  ;;  %1709 = vmatmul.mubr.msk.f32.vlgmr.msra.gmra.mrb[20].mxu1 %vm390_vm1, %v368_v40  ;;  %v2595_v56 = vadd.f32 %v1517_v47, %v237_v51  ;;  %v1461_v57 = vadd.f32 %v1460_v53, %v1459_v52  ;;  %v950_v40 = vld [vmem:[%s2858_s3 + $0x1d8] sm:$0xff]  ;;  %v952_v47 = vld [vmem:[%s2858_s3 + $0x1e8] sm:$0xff]  ;;  %v953_v52 = vld [vmem:[%s2858_s3 + $0x1f0] sm:$0xff] }
 0x112   :  { %v1519_v58 = vpop.f32.mrb[13].mxu1  ;;  %1962 = vmatpush3.bf16.msra.mxu0 %v1961_v44  ;;  %1989 = vmatpush3.bf16.msra.mxu1 %v1988_v46  ;;  %v867_v44 = vld [vmem:[%s2858_s3 + $0x190] sm:$0xff]  ;;  %v868_v46 = vld [vmem:[%s2858_s3 + $0x198] sm:$0xff]  ;;  %v2018_v50 = vpack.c.bf16 %v952_v47, %v951_v42  ;;  %v870_v51 = vld [vmem:[%s2858_s3 + $0x1a8] sm:$0xff] }
 0x113   :  { %v1520_v62 = vadd.f32 %v1519_v58, %v1518_v54  ;;  %1975 = vmatprep.subr.bf16.mxu0 %v2074_v38  ;;  %1990 = vmatprep.subr.bf16.mxu1 %v2074_v38  ;;  %v242_v2 = vadd.f32 %v1461_v57, %v2502_v31  ;;  %v1462_v3 = vpop.f32.mrb[14].mxu0  ;;  %v370_v33 = vmax.f32 %v2595_v56, 0.0  ;;  %v2003_v48 = vpack.c.bf16 %v868_v46, %v867_v44  ;;  %v954_v53 = vld [vmem:[%s2858_s3 + $0x1f8] sm:$0xff]  ;;  %v871_v56 = vld [vmem:[%s2858_s3 + $0x1b0] sm:$0xff] }
 0x114   :  { %1746 = vmatprep.mubr.msk.f32.mxu1 %vm2075_vm0, %v2076_v29  ;;  %v1463_v4 = vpop.f32.mrb[15].mxu0  ;;  %v2006_v54 = vpack.c.bf16 %v870_v51, %v869_v49  ;;  %v872_v57 = vld [vmem:[%s2858_s3 + $0x1b8] sm:$0xff] }
 0x115   :  { %v1521_v5 = vpop.f32.mrb[14].mxu1  ;;  %1690 = vmatmul.mubr.msk.f32.vlgmr.msra.gmra.mrb[20].mxu0 %vm390_vm1, %v367_v55  ;;  %v1464_v6 = vadd.f32 %v1463_v4, %v1462_v3  ;;  %v2615_v7 = vadd.f32 %v1520_v62, %v242_v2  ;;  %v2021_v55 = vpack.c.bf16 %v954_v53, %v953_v52  ;;  %v2027_v2 = vpack.c.bf16 %v1032_v1, %v1031_v0  ;;  %v1033_v3 = vld [vmem:[%s2858_s3 + $0x220] sm:$0xff]  ;;  %v1034_v4 = vld [vmem:[%s2858_s3 + $0x228] sm:$0xff] }
 0x116   :  { %v1522_v8 = vpop.f32.mrb[15].mxu1  ;;  %1977 = vmatpush3.bf16.msra.mxu0 %v1976_v59  ;;  %1992 = vmatpush3.bf16.msra.mxu1 %v1991_v61  ;;  %v2009_v59 = vpack.c.bf16 %v872_v57, %v871_v56  ;;  %v1030_v61 = vld [vmem:[%s2858_s3 + $0x208] sm:$0xff]  ;;  %v1402_v57 = vld [vmem:[%s2862_s4] ss:$0 sm:$0xff] }
 0x117   :  { %v1523_v12 = vadd.f32 %v1522_v8, %v1521_v5  ;;  %1978 = vmatprep.subr.bf16.mxu0 %v2074_v38  ;;  %1993 = vmatprep.subr.bf16.mxu1 %v2074_v38  ;;  %v247_v16 = vadd.f32 %v1464_v6, %v2502_v31  ;;  %v1465_v17 = vpop.f32.mrb[16].mxu0  ;;  %v371_v62 = vmax.f32 %v2615_v7, 0.0  ;;  %v2024_v63 = vpack.c.bf16 %v1030_v61, %v1029_v60  ;;  %v1035_v6 = vld [vmem:[%s2858_s3 + $0x230] sm:$0xff]  ;;  %v1036_v7 = vld [vmem:[%s2858_s3 + $0x238] sm:$0xff]  ;;  %v1298_v1 = vld [vmem:[%s2863_s9] sm:$0xff] }
 0x118   :  { %1727 = vmatprep.mubr.msk.f32.mxu0 %vm2075_vm0, %v2076_v29  ;;  %v1466_v18 = vpop.f32.mrb[17].mxu0  ;;  %v2030_v5 = vpack.c.bf16 %v1034_v4, %v1033_v3  ;;  %v2033_v8 = vpack.c.bf16 %v1036_v7, %v1035_v6  ;;  %v1301_v4 = vld [vmem:[%s2863_s9 + $0x18] sm:$0xff]  ;;  %v1302_v6 = vld [vmem:[%s2863_s9 + $0x20] sm:$0xff]  ;;  %v1303_v7 = vld [vmem:[%s2863_s9 + $0x28] sm:$0xff] }
 0x119   :  { %v1524_v19 = vpop.f32.mrb[16].mxu1  ;;  %v2634_v20 = vadd.f32 %v1523_v12, %v247_v16  ;;  %v1467_v21 = vadd.f32 %v1466_v18, %v1465_v17  ;;  %v1122_v12 = vld [vmem:[%s2860_s5 + $0x10] sm:$0xff]  ;;  %v1124_v16 = vld [vmem:[%s2860_s5 + $0x20] sm:$0xff]  ;;  %v1125_v17 = vld [vmem:[%s2860_s5 + $0x28] sm:$0xff] }
 0x11a   :  { %v1525_v22 = vpop.f32.mrb[17].mxu1  ;;  %1980 = vmatpush3.bf16.msra.mxu0 %v1979_v9  ;;  %1995 = vmatpush3.bf16.msra.mxu1 %v1994_v11  ;;  %v1121_v11 = vld [vmem:[%s2860_s5 + $0x8] sm:$0xff]  ;;  %v2039_v15 = vpack.c.bf16 %v1123_v14, %v1122_v12  ;;  %v2042_v18 = vpack.c.bf16 %v1125_v17, %v1124_v16  ;;  %v1304_v14 = vld [vmem:[%s2863_s9 + $0x30] sm:$0xff] }
 0x11b   :  { %v1526_v26 = vadd.f32 %v1525_v22, %v1524_v19  ;;  %1981 = vmatprep.subr.bf16.mxu0 %v2074_v38  ;;  %1996 = vmatprep.subr.bf16.mxu1 %v2074_v38  ;;  %v252_v32 = vadd.f32 %v1467_v21, %v2502_v31  ;;  %v949_v31 = vld [vmem:[%s2858_s3 + $0x1d0] sm:$0xff]  ;;  %v372_v58 = vmax.f32 %v2634_v20, 0.0  ;;  %v2036_v13 = vpack.c.bf16 %v1121_v11, %v1120_v10  ;;  %v1127_v20 = vld [vmem:[%s2860_s5 + $0x38] sm:$0xff]  ;;  %v1209_v22 = vld [vmem:[%s2861_s7] sm:$0xff] }
 0x11c   :  { %v2015_v45 = vpack.c.bf16 %v950_v40, %v949_v31  ;;  %v1126_v19 = vld [vmem:[%s2860_s5 + $0x30] sm:$0xff] }
 0x11d   :  { %v2652_v34 = vadd.f32 %v1526_v26, %v252_v32  ;;  %v2045_v21 = vpack.c.bf16 %v1127_v20, %v1126_v19  ;;  %v1212_v26 = vld [vmem:[%s2861_s7 + $0x18] sm:$0xff]  ;;  %v2054_v32 = vpack.c.bf16 %v1214_v30, %v1213_v28 }
 0x11e   :  { %1983 = vmatpush3.bf16.msra.mxu0 %v1982_v23  ;;  %1998 = vmatpush3.bf16.msra.mxu1 %v1997_v25  ;;  %v1210_v23 = vld [vmem:[%s2861_s7 + $0x8] sm:$0xff]  ;;  %v2051_v27 = vpack.c.bf16 %v1212_v26, %v1211_v24 }
 0x11f   :  { %1984 = vmatprep.subr.bf16.mxu0 %v2074_v38  ;;  %2011 = vmatprep.subr.bf16.mxu1 %v2074_v38  ;;  %v373_v9 = vmax.f32 %v2652_v34, 0.0  ;;  %v2048_v25 = vpack.c.bf16 %v1210_v23, %v1209_v22 }
 0x121   :  { %1747 = vmatmul.mubr.msk.f32.vlgmr.msra.gmra.mrb[22].mxu1 %vm390_vm1, %v370_v33 }
 0x122   :  { %1986 = vmatpush3.bf16.msra.mxu0 %v1985_v35  ;;  %2013 = vmatpush3.bf16.msra.mxu1 %v2012_v37 }
 0x123   :  { %1999 = vmatprep.subr.bf16.mxu0 %v2074_v38  ;;  %2014 = vmatprep.subr.bf16.mxu1 %v2074_v38 }
 0x124   :  { %1784 = vmatprep.mubr.msk.f32.mxu1 %vm2075_vm0, %v2076_v29 }
 0x125   :  { %1728 = vmatmul.mubr.msk.f32.vlgmr.msra.gmra.mrb[22].mxu0 %vm390_vm1, %v369_v41 }
 0x126   :  { %2001 = vmatpush3.bf16.msra.mxu0 %v2000_v43  ;;  %2016 = vmatpush3.bf16.msra.mxu1 %v2015_v45 }
 0x127   :  { %2002 = vmatprep.subr.bf16.mxu0 %v2074_v38  ;;  %2017 = vmatprep.subr.bf16.mxu1 %v2074_v38 }
 0x128   :  { %1765 = vmatprep.mubr.msk.f32.mxu0 %vm2075_vm0, %v2076_v29 }
 0x12a   :  { %2004 = vmatpush3.bf16.msra.mxu0 %v2003_v48  ;;  %2019 = vmatpush3.bf16.msra.mxu1 %v2018_v50 }
 0x12b   :  { %2005 = vmatprep.subr.bf16.mxu0 %v2074_v38  ;;  %2020 = vmatprep.subr.bf16.mxu1 %v2074_v38 }
 0x12e   :  { %2007 = vmatpush3.bf16.msra.mxu0 %v2006_v54  ;;  %2022 = vmatpush3.bf16.msra.mxu1 %v2021_v55 }
 0x12f   :  { %2008 = vmatprep.subr.bf16.mxu0 %v2074_v38  ;;  %2035 = vmatprep.subr.bf16.mxu1 %v2074_v38 }
 0x131   :  { %1785 = vmatmul.mubr.msk.f32.vlgmr.msra.gmra.mrb[24].mxu1 %vm390_vm1, %v372_v58 }
 0x132   :  { %2010 = vmatpush3.bf16.msra.mxu0 %v2009_v59  ;;  %1822 = vmatprep.mubr.msk.f32.mxu1 %vm2075_vm0, %v2076_v29 }
 0x133   :  { %2023 = vmatprep.subr.bf16.mxu0 %v2074_v38  ;;  %2037 = vmatpush3.bf16.msra.mxu1 %v2036_v13 }
 0x134   :  { %2038 = vmatprep.subr.bf16.mxu1 %v2074_v38 }
 0x135   :  { %1766 = vmatmul.mubr.msk.f32.vlgmr.msra.gmra.mrb[24].mxu0 %vm390_vm1, %v371_v62  ;;  %v1215_v62 = vld [vmem:[%s2861_s7 + $0x30] sm:$0xff] }
 0x136   :  { %2025 = vmatpush3.bf16.msra.mxu0 %v2024_v63  ;;  %1803 = vmatprep.mubr.msk.f32.mxu0 %vm2075_vm0, %v2076_v29  ;;  %v1216_v63 = vld [vmem:[%s2861_s7 + $0x38] sm:$0xff] }
 0x137   :  { %2026 = vmatprep.subr.bf16.mxu0 %v2074_v38  ;;  %2040 = vmatpush3.bf16.msra.mxu1 %v2039_v15  ;;  %v2057_v0 = vpack.c.bf16 %v1216_v63, %v1215_v62  ;;  %v1305_v15 = vld [vmem:[%s2863_s9 + $0x38] sm:$0xff] }
 0x138   :  { %2041 = vmatprep.subr.bf16.mxu1 %v2074_v38  ;;  %v2069_v16 = vpack.c.bf16 %v1305_v15, %v1304_v14 }
 0x13a   :  { %2028 = vmatpush3.bf16.msra.mxu0 %v2027_v2  ;;  %v1299_v2 = vld [vmem:[%s2863_s9 + $0x8] sm:$0xff] }
 0x13b   :  { %2029 = vmatprep.subr.bf16.mxu0 %v2074_v38  ;;  %2043 = vmatpush3.bf16.msra.mxu1 %v2042_v18  ;;  %v2060_v3 = vpack.c.bf16 %v1299_v2, %v1298_v1 }
 0x13c   :  { %2044 = vmatprep.subr.bf16.mxu1 %v2074_v38 }
 0x13e   :  { %2031 = vmatpush3.bf16.msra.mxu0 %v2030_v5 }
 0x13f   :  { %2032 = vmatprep.subr.bf16.mxu0 %v2074_v38  ;;  %2046 = vmatpush3.bf16.msra.mxu1 %v2045_v21  ;;  %v1407_v21 = vld [vmem:[%s2866_s10] ss:$0 sm:$0xff] }
 0x140   :  { %2059 = vmatprep.subr.bf16.mxu1 %v2074_v38 }
 0x142   :  { %2034 = vmatpush3.bf16.msra.mxu0 %v2033_v8  ;;  %v2066_v8 = vpack.c.bf16 %v1303_v7, %v1302_v6 }
 0x143   :  { %2047 = vmatprep.subr.bf16.mxu0 %v2074_v38 }
 0x145   :  { %1804 = vmatmul.mubr.msk.f32.vlgmr.msra.gmra.mrb[26].mxu0 %vm390_vm1, %v373_v9  ;;  %v1403_v9 = vld [vmem:[%s2864_s6] ss:$0 sm:$0xff] }
 0x146   :  { %1841 = vmatprep.mubr.msk.f32.mxu0 %vm2075_vm0, %v2076_v29  ;;  %2049 = vmatpush3.bf16.msra.mxu0 %v2048_v25 }
 0x147   :  { %2050 = vmatprep.subr.bf16.mxu0 %v2074_v38 }
 0x14a   :  { %2052 = vmatpush3.bf16.msra.mxu0 %v2051_v27 }
 0x14b   :  { %2053 = vmatprep.subr.bf16.mxu0 %v2074_v38 }
 0x14e   :  { %2055 = vmatpush3.bf16.msra.mxu0 %v2054_v32 }
 0x14f   :  { %2056 = vmatprep.subr.bf16.mxu0 %v2074_v38 }
 0x152   :  { %2058 = vmatpush3.bf16.msra.mxu0 %v2057_v0 }
 0x1d4   :  { %v533_v33 = vpop.f32.mrb[18].mxu1 }
 0x1d5   :  { %v1672_v34 = vpop.f32.mrb[19].mxu1 }
 0x1d8   :  { %v460_v35 = vpop.f32.mrb[18].mxu0 }
 0x1d9   :  { %v534_v36 = vadd.f32 %v533_v33, %v460_v35  ;;  %v1653_v37 = vpop.f32.mrb[19].mxu0 }
 0x1e4   :  { %v696_v39 = vpop.f32.mrb[20].mxu1 }
 0x1e5   :  { %v1710_v31 = vpop.f32.mrb[21].mxu1 }
 0x1e8   :  { %v614_v40 = vpop.f32.mrb[20].mxu0 }
 0x1e9   :  { %v618_v41 = vadd.f32 %v614_v40, %v534_v36  ;;  %v1691_v43 = vpop.f32.mrb[21].mxu0 }
 0x1eb   :  { %v700_v44 = vadd.f32 %v696_v39, %v618_v41 }
 0x1f4   :  { %v860_v45 = vpop.f32.mrb[22].mxu1 }
 0x1f5   :  { %v1748_v46 = vpop.f32.mrb[23].mxu1 }
 0x1f8   :  { %v778_v42 = vpop.f32.mrb[22].mxu0 }
 0x1f9   :  { %v782_v47 = vadd.f32 %v778_v42, %v700_v44  ;;  %v1729_v48 = vpop.f32.mrb[23].mxu0 }
 0x1fb   :  { %v864_v49 = vadd.f32 %v860_v45, %v782_v47 }
 0x204   :  { %v1024_v50 = vpop.f32.mrb[24].mxu1 }
 0x205   :  { %v1786_v51 = vpop.f32.mrb[25].mxu1 }
 0x208   :  { %v942_v52 = vpop.f32.mrb[24].mxu0 }
 0x209   :  { %v946_v53 = vadd.f32 %v942_v52, %v864_v49  ;;  %v1767_v54 = vpop.f32.mrb[25].mxu0 }
 0x20b   :  { %v1028_v55 = vadd.f32 %v1024_v50, %v946_v53 }
 0x218   :  { %v1106_v56 = vpop.f32.mrb[26].mxu0 }
 0x219   :  { %v1110_v58 = vadd.f32 %v1106_v56, %v1028_v55  ;;  %v1805_v59 = vpop.f32.mrb[27].mxu0 }
 0x21b   :  { %v1118_v60 = vadd.f32 %v1402_v57, %v1110_v58 }
 0x21d   :  { %v1119_v61 = vmax.f32 %v1118_v60, 0.0 }
 0x21f   :  { %1823 = vmatmul.mubr.msk.f32.vlgmr.msra.gmra.mrb[26].mxu1 %vm390_vm1, %v1119_v61 }
 0x220   :  { %1860 = vmatprep.mubr.msk.f32.mxu1 %vm2075_vm0, %v2076_v29  ;;  %v1300_v29 = vld [vmem:[%s2863_s9 + $0x10] sm:$0xff]  ;;  %2061 = vmatpush3.bf16.msra.mxu1 %v2060_v3 }
 0x221   :  { %v2063_v5 = vpack.c.bf16 %v1301_v4, %v1300_v29  ;;  %2062 = vmatprep.subr.bf16.mxu1 %v2074_v38 }
 0x224   :  { %2064 = vmatpush3.bf16.msra.mxu1 %v2063_v5 }
 0x225   :  { %2065 = vmatprep.subr.bf16.mxu1 %v2074_v38 }
 0x228   :  { %2067 = vmatpush3.bf16.msra.mxu1 %v2066_v8 }
 0x229   :  { %2068 = vmatprep.subr.bf16.mxu1 %v2074_v38  ;;  %v1405_v38 = vld [vmem:[%s2865_s8] ss:$0 sm:$0xff] }
 0x22c   :  { %2070 = vmatpush3.bf16.msra.mxu1 %v2069_v16 }
 0x2f2   :  { %v1204_v10 = vpop.f32.mrb[26].mxu1 }
 0x2f3   :  { %v1205_v11 = vadd.f32 %v1403_v9, %v1204_v10  ;;  %v1824_v12 = vpop.f32.mrb[27].mxu1 }
 0x2f5   :  { %v1208_v13 = vmax.f32 %v1205_v11, 0.0 }
 0x2f7   :  { %1842 = vmatmul.mubr.msk.f32.vlgmr.msra.gmra.mrb[28].mxu0 %vm390_vm1, %v1208_v13 }
 0x3ca   :  { %v1293_v17 = vpop.f32.mrb[28].mxu0 }
 0x3cb   :  { %v1294_v18 = vadd.f32 %v1405_v38, %v1293_v17  ;;  %v1843_v19 = vpop.f32.mrb[29].mxu0 }
 0x3cd   :  { %v1297_v20 = vmax.f32 %v1294_v18, 0.0 }
 0x3cf   :  { %1861 = vmatmul.mubr.msk.f32.vlgmr.msra.gmra.mrb[28].mxu1 %vm390_vm1, %v1297_v20 }
 0x4a2   :  { %v1382_v22 = vpop.f32.mrb[28].mxu1 }
 0x4a3   :  { %v1383_v23 = vadd.f32 %v1407_v21, %v1382_v22  ;;  %v1862_v24 = vpop.f32.mrb[29].mxu1 }
 0x4a5   :  { %1387 = vst.msk [vmem:[%s2867_s11] sm:$0xff] %vm1386_vm2, %v1383_v23 }

</bundles_post_ra>
